<compile_context>
chip_gen: v7x
topology: tpu7x:2x2x1
jax: 0.10.0
libtpu: 0.0.40
codegen_flags: <defaults>
</compile_context>

<pallas_src>
import math

import jax
import jax.numpy as jnp
from jax.experimental import pallas as pl
from jax.experimental.pallas import tpu as pltpu

_LANES = 128
_SUBLANES = 8


def _round_up(v, m):
    return (v + m - 1) // m * m


# -----------------------------------------------------------------------------
# Feature construction (glue, plain JAX): temporal encoding + one-hot + concat.
# -----------------------------------------------------------------------------
def _build_features(times, values, measurements, non_pad_mask, *, d_time, num_mods):
    i = jnp.arange(d_time)
    pos_vec = jnp.power(10000.0, 2.0 * (i // 2).astype(jnp.float32) / d_time)
    r = times[:, :, None] / pos_vec[None, None, :]
    te = jnp.where((i % 2 == 0)[None, None, :], jnp.sin(r), jnp.cos(r))
    one_hot = jax.nn.one_hot(measurements, num_mods + 1, dtype=jnp.float32)[:, :, 1:]
    x = jnp.concatenate([te, values[:, :, None].astype(jnp.float32), one_hot], axis=-1)
    mask = non_pad_mask.astype(jnp.float32)
    return x, mask


# -----------------------------------------------------------------------------
# Weight folding / packing: 19 tensors -> 2 (8,128)-padded arrays.
# -----------------------------------------------------------------------------
def _fold_and_pack(params, *, dim_s, phi_w, psi_w, psi_lat, n_heads, rho_w, x_lanes):
    f32 = jnp.float32
    hi = jax.lax.Precision.HIGHEST
    nhw = n_heads * phi_w

    # fold the 'wad' dense into the pooled -> preattention projection (exact algebra)
    w_pool = jnp.dot(params["wad"], params["wka"], precision=hi)          # [psi_lat, m]
    b_att = params["bke"] + jnp.dot(params["bad"], params["wka"], precision=hi)

    r_w1 = 0
    r_w2 = r_w1 + x_lanes
    r_wsl = r_w2 + _LANES
    r_wpool = r_wsl + _LANES
    r_wr0 = r_wpool + _LANES
    r_wr1 = r_wr0 + _round_up(nhw, _SUBLANES)
    n_rows = r_wr1 + _LANES

    w = jnp.zeros((n_rows, _LANES), f32)
    # fused layer-1: [phi0 | psi0 | key-projection] share LHS x -> one MXU pass
    w = w.at[r_w1:r_w1 + dim_s, 0:phi_w].set(params["wp0"])
    w = w.at[r_w1:r_w1 + dim_s, phi_w:phi_w + psi_w].set(params["ws0"])
    w = w.at[r_w1:r_w1 + dim_s, phi_w + psi_w:phi_w + psi_w + n_heads].set(params["wkx"])
    # layer-2: block-diagonal (wp1 | ws1)
    w = w.at[r_w2:r_w2 + phi_w, 0:phi_w].set(params["wp1"])
    w = w.at[r_w2 + phi_w:r_w2 + phi_w + psi_w, phi_w:phi_w + psi_w].set(params["ws1"])
    # psi latent projection (reads h2 columns [phi_w, phi_w+psi_w))
    w = w.at[r_wsl + phi_w:r_wsl + phi_w + psi_w, 0:psi_lat].set(params["wsl"])
    # pooled -> per-head preattention (wad folded in)
    w = w.at[r_wpool:r_wpool + psi_lat, 0:n_heads].set(w_pool)
    # rho layers (outputs zero-padded to a full 128-lane slab)
    w = w.at[r_wr0:r_wr0 + nhw, 0:rho_w].set(params["wr0"].reshape(nhw, rho_w))
    w = w.at[r_wr1:r_wr1 + rho_w, 0:rho_w].set(params["wr1"])

    b = jnp.zeros((_SUBLANES, _LANES), f32)
    b = b.at[0, 0:phi_w].set(params["bp0"][0])
    b = b.at[0, phi_w:phi_w + psi_w].set(params["bs0"][0])
    b = b.at[0, phi_w + psi_w:phi_w + psi_w + n_heads].set(b_att[0])
    b = b.at[1, 0:phi_w].set(params["bp1"][0])
    b = b.at[1, phi_w:phi_w + psi_w].set(params["bs1"][0])
    b = b.at[2, 0:psi_lat].set(params["bsl"][0])
    b = b.at[3, 0:rho_w].set(params["br0"][0])
    b = b.at[4, 0:rho_w].set(params["br1"][0])

    offs = dict(w1=r_w1, w2=r_w2, wsl=r_wsl, wpool=r_wpool, wr0=r_wr0, wr1=r_wr1,
                rows=n_rows)
    return w, b, offs


# -----------------------------------------------------------------------------
# Pallas kernel + wrapper.
# -----------------------------------------------------------------------------
def _deep_attention_pallas(x, mask, params, *, tile_b=16):
    """x: [B, P, dim_s] f32, mask: [B, P, 1] f32 -> [B, rho_w] f32."""
    B, P, dim_s = x.shape
    phi_w = params["wp0"].shape[1]
    psi_w = params["ws0"].shape[1]
    psi_lat = params["wsl"].shape[1]
    n_heads = params["wka"].shape[1]
    rho_w = params["wr1"].shape[1]
    nhw = n_heads * phi_w

    assert tile_b % _SUBLANES == 0
    assert P % _SUBLANES == 0, "set length must be a multiple of 8"
    assert phi_w + psi_w + n_heads <= _LANES
    assert max(psi_lat, nhw, rho_w) <= _LANES

    x_lanes = _round_up(dim_s, _LANES)
    wpack, bpack, offs = _fold_and_pack(
        params, dim_s=dim_s, phi_w=phi_w, psi_w=psi_w, psi_lat=psi_lat,
        n_heads=n_heads, rho_w=rho_w, x_lanes=x_lanes)

    # pad batch to a multiple of tile_b (padded examples have mask==0 -> harmless),
    # zero-pad the feature dim to a full lane width, and flatten (B*P, D) for the
    # pointwise MXU passes.
    b_pad = _round_up(max(B, tile_b), tile_b)
    x_p = jnp.pad(x.astype(jnp.float32),
                  ((0, b_pad - B), (0, 0), (0, x_lanes - dim_s)))
    m_p = jnp.pad(mask.astype(jnp.float32), ((0, b_pad - B), (0, 0), (0, 0)))
    x_flat = x_p.reshape(b_pad * P, x_lanes)
    m_flat = m_p.reshape(b_pad * P, 1)

    tb = tile_b
    rows = tb * P
    r_w1, r_w2, r_wsl = offs["w1"], offs["w2"], offs["wsl"]
    r_wpool, r_wr0, r_wr1 = offs["wpool"], offs["wr0"], offs["wr1"]

    def kernel(x_ref, m_ref, w_ref, b_ref, o_ref):
        xv = x_ref[...]                                  # [rows, x_lanes]
        mk = m_ref[...]                                  # [rows, 1]
        b1, b2 = b_ref[0:1, :], b_ref[1:2, :]
        bsl, br0, br1 = b_ref[2:3, :], b_ref[3:4, :], b_ref[4:5, :]

        # --- fused layer 1: [phi0 | psi0 | key-proj] in a single MXU pass ----
        h1 = jnp.dot(xv, w_ref[r_w1:r_w1 + x_lanes, :],
                     preferred_element_type=jnp.float32) + b1
        pre_x = h1[:, phi_w + psi_w:phi_w + psi_w + n_heads]     # key path: no relu
        h1r = jnp.maximum(h1, 0.0)

        # --- layer 2: block-diagonal (wp1 | ws1) ------------------------------
        h2 = jnp.maximum(
            jnp.dot(h1r, w_ref[r_w2:r_w2 + _LANES, :],
                    preferred_element_type=jnp.float32) + b2, 0.0)
        encoded = h2[:, 0:phi_w] * mk                            # [rows, phi_w]

        # --- psi latent projection + masked mean pool per example ------------
        psi = jnp.dot(h2, w_ref[r_wsl:r_wsl + _LANES, :],
                      preferred_element_type=jnp.float32) + bsl
        psi3 = psi.reshape(tb, P, _LANES)
        mk3 = mk.reshape(tb, P, 1)
        denom = jnp.maximum(jnp.sum(mk3, axis=1), 1e-7)          # [tb, 1]
        # NOTE: pl.reciprocal(approx=True) would push this to the EUP for free;
        # kept exact so the kernel stays bit-close to the unfused reference math.
        pooled = jnp.sum(psi3 * mk3, axis=1) * pl.reciprocal(denom)   # [tb, 128]
        pre_pool = jnp.dot(pooled, w_ref[r_wpool:r_wpool + _LANES, :],
                           preferred_element_type=jnp.float32)[:, 0:n_heads]

        # --- softmax over the set dim (logits unmasked, as in the ref module) -
        preattn = pre_x.reshape(tb, P, n_heads) + pre_pool[:, None, :]
        s = preattn - jnp.max(preattn, axis=1, keepdims=True)
        e = jnp.exp(s)
        att = e * pl.reciprocal(jnp.sum(e, axis=1, keepdims=True))   # [tb, P, m]

        # --- head aggregation over the whole TB*P tile (no per-example M=1 dots)
        enc3 = encoded.reshape(tb, P, phi_w)
        agg_flat = jnp.concatenate(
            [jnp.sum(att[:, :, h:h + 1] * enc3, axis=1) for h in range(n_heads)],
            axis=-1)                                             # [tb, n_heads*phi_w]

        # --- rho MLP; output zero-padded to 128 lanes -> unmasked lane-dense store
        r = jnp.maximum(
            jnp.dot(agg_flat, w_ref[r_wr0:r_wr0 + nhw, :],
                    preferred_element_type=jnp.float32) + br0, 0.0)
        out = jnp.maximum(
            jnp.dot(r, w_ref[r_wr1:r_wr1 + _LANES, :],
                    preferred_element_type=jnp.float32) + br1, 0.0)
        o_ref[...] = out                                         # [tb, 128]

    grid_spec = pltpu.PrefetchScalarGridSpec(
        num_scalar_prefetch=0,
        grid=(b_pad // tb,),
        in_specs=[
            pl.BlockSpec((rows, x_lanes), lambda i: (i, 0)),
            pl.BlockSpec((rows, 1), lambda i: (i, 0)),
            pl.BlockSpec((offs["rows"], _LANES), lambda i: (0, 0)),
            pl.BlockSpec((_SUBLANES, _LANES), lambda i: (0, 0)),
        ],
        out_specs=pl.BlockSpec((tb, _LANES), lambda i: (i, 0)),
    )
    out = pl.pallas_call(
        kernel,
        out_shape=jax.ShapeDtypeStruct((b_pad, _LANES), jnp.float32),
        grid_spec=grid_spec,
        compiler_params=pltpu.CompilerParams(
            dimension_semantics=("parallel",)),
    )(x_flat, m_flat, wpack, bpack)
    return out[:B, :rho_w]


def deep_attention_forward(times, values, measurements, non_pad_mask, params, *,
                           d_time, num_mods, tile_b=16):
    x, mask = _build_features(times, values, measurements, non_pad_mask,
                              d_time=d_time, num_mods=num_mods)
    return _deep_attention_pallas(x, mask, params, tile_b=tile_b)


# -----------------------------------------------------------------------------
# Parameter init + pure-JAX reference (mirrors the module math, unfused).
# -----------------------------------------------------------------------------
def init_params(key, *, dim_s, phi_w, psi_w, psi_lat, dpd, n_heads, rho_w):
    def dense(k, din, dout):
        kw, kb = jax.random.split(k)
        w = jax.random.normal(kw, (din, dout), jnp.float32) * (1.0 / math.sqrt(din))
        b = jax.random.normal(kb, (1, dout), jnp.float32) * 0.01
        return w, b

    keys = jax.random.split(key, 10)
    p = {}
    p["wp0"], p["bp0"] = dense(keys[0], dim_s, phi_w)
    p["wp1"], p["bp1"] = dense(keys[1], phi_w, phi_w)
    p["ws0"], p["bs0"] = dense(keys[2], dim_s, psi_w)
    p["ws1"], p["bs1"] = dense(keys[3], psi_w, psi_w)
    p["wsl"], p["bsl"] = dense(keys[4], psi_w, psi_lat)
    p["wad"], p["bad"] = dense(keys[5], psi_lat, psi_lat)

    # attention key projection + per-head query, folded into one matrix
    wk, bk = dense(keys[6], dim_s + psi_lat, n_heads * dpd)
    wq = jax.random.normal(keys[7], (n_heads, dpd), jnp.float32) * (1.0 / math.sqrt(dpd))
    scale = 1.0 / math.sqrt(dpd)
    wk3 = wk.reshape(dim_s + psi_lat, n_heads, dpd)
    w_eff = jnp.einsum("dhk,hk->dh", wk3, wq) * scale             # [dim_s+psi_lat, m]
    b_eff = (jnp.einsum("hk,hk->h", bk.reshape(n_heads, dpd), wq) * scale)[None, :]
    p["wkx"] = w_eff[:dim_s]
    p["wka"] = w_eff[dim_s:]
    p["bke"] = b_eff

    wr0, p["br0"] = dense(keys[8], n_heads * phi_w, rho_w)
    p["wr0"] = wr0.reshape(n_heads, phi_w, rho_w)                 # head-major flatten
    p["wr1"], p["br1"] = dense(keys[9], rho_w, rho_w)
    return p


def _reference_forward(x, mask, p):
    """Pure-JAX reference mirroring the module math (for correctness checking)."""
    relu = jax.nn.relu
    h = relu(x @ p["wp0"] + p["bp0"])
    h = relu(h @ p["wp1"] + p["bp1"])
    encoded = h * mask
    q = relu(x @ p["ws0"] + p["bs0"])
    q = relu(q @ p["ws1"] + p["bs1"])
    q = q @ p["wsl"] + p["bsl"]
    denom = jnp.maximum(mask.sum(axis=1, keepdims=True), 1e-7)
    pooled = (q * mask).sum(axis=1, keepdims=True) / denom
    pooled = pooled @ p["wad"] + p["bad"]
    preattn = x @ p["wkx"] + pooled @ p["wka"] + p["bke"]
    att = jax.nn.softmax(preattn, axis=1)
    agg = jnp.einsum("bpm,bpd->bmd", att, encoded)
    agg = agg.reshape(agg.shape[0], -1)
    wr0_flat = p["wr0"].reshape(-1, p["wr0"].shape[-1])
    r = relu(agg @ wr0_flat + p["br0"])
    r = relu(r @ p["wr1"] + p["br1"])
    return r


if __name__ == "__main__":
    B, P = 2, 8
    d_time, num_mods = 4, 6
    phi_w, psi_w, psi_lat, dpd, n_heads, rho_w = 4, 4, 8, 4, 2, 4
    dim_s = num_mods + d_time + 1

    key = jax.random.PRNGKey(0)
    k_t, k_v, k_m, k_p = jax.random.split(key, 4)
    times = jnp.cumsum(jax.random.uniform(k_t, (B, P), jnp.float32), axis=-1)
    values = jax.random.normal(k_v, (B, P), jnp.float32)
    measurements = jax.random.randint(k_m, (B, P), 1, num_mods + 1)
    lengths = jnp.array([P, 5])
    non_pad_mask = (jnp.arange(P)[None, :] < lengths[:, None]).astype(jnp.float32)[:, :, None]
    measurements = jnp.where(non_pad_mask[:, :, 0] > 0, measurements, 0)

    params = init_params(k_p, dim_s=dim_s, phi_w=phi_w, psi_w=psi_w, psi_lat=psi_lat,
                         dpd=dpd, n_heads=n_heads, rho_w=rho_w)

    out = deep_attention_forward(times, values, measurements, non_pad_mask, params,
                                 d_time=d_time, num_mods=num_mods)
    out = jax.block_until_ready(out)

    x, mask = _build_features(times, values, measurements, non_pad_mask,
                              d_time=d_time, num_mods=num_mods)
    ref = _reference_forward(x, mask, params)

    assert out.shape == (B, rho_w)
    # tolerance covers float reordering from the fused / folded weight matrices
    assert jnp.allclose(out, ref, atol=2e-3, rtol=2e-3), (out, ref)
    print("KERNEL_OK")
</pallas_src>

<mosaic_0001>
module attributes {stable_mosaic.version = 11 : i64} {
  func.func @kernel(%arg0: i32, %arg1: memref<128x128xf32, #tpu.memory_space<vmem>>, %arg2: memref<128x1xf32, #tpu.memory_space<vmem>>, %arg3: memref<648x128xf32, #tpu.memory_space<vmem>>, %arg4: memref<8x128xf32, #tpu.memory_space<vmem>>, %arg5: memref<16x128xf32, #tpu.memory_space<vmem>>) attributes {dimension_semantics = [#tpu.dimension_semantics<parallel>], iteration_bounds = array<i64: 1>, scalar_prefetch = 0 : i64, scratch_operands = 0 : i64, tpu.core_type = #tpu.core_type<tc>, window_params = [{transform_indices = @transform_0, window_bounds = array<i64: 128, 128>}, {transform_indices = @transform_1, window_bounds = array<i64: 128, 1>}, {pipeline_mode = #tpu.pipeline_mode<synchronous>, transform_indices = @transform_2, window_bounds = array<i64: 648, 128>}, {pipeline_mode = #tpu.pipeline_mode<synchronous>, transform_indices = @transform_3, window_bounds = array<i64: 8, 128>}, {transform_indices = @transform_4, window_bounds = array<i64: 16, 128>}]} {
    %c0 = arith.constant 0 : index
    %c0_0 = arith.constant 0 : index
    %0 = vector.load %arg1[%c0, %c0_0] : memref<128x128xf32, #tpu.memory_space<vmem>>, vector<128x128xf32>
    %c0_1 = arith.constant 0 : index
    %c0_2 = arith.constant 0 : index
    %1 = vector.load %arg2[%c0_1, %c0_2] : memref<128x1xf32, #tpu.memory_space<vmem>>, vector<128x1xf32>
    %c0_3 = arith.constant 0 : index
    %c0_4 = arith.constant 0 : index
    %2 = vector.load %arg4[%c0_3, %c0_4] : memref<8x128xf32, #tpu.memory_space<vmem>>, vector<1x128xf32>
    %c1 = arith.constant 1 : index
    %c0_5 = arith.constant 0 : index
    %3 = vector.load %arg4[%c1, %c0_5] : memref<8x128xf32, #tpu.memory_space<vmem>>, vector<1x128xf32>
    %c2 = arith.constant 2 : index
    %c0_6 = arith.constant 0 : index
    %4 = vector.load %arg4[%c2, %c0_6] : memref<8x128xf32, #tpu.memory_space<vmem>>, vector<1x128xf32>
    %c3 = arith.constant 3 : index
    %c0_7 = arith.constant 0 : index
    %5 = vector.load %arg4[%c3, %c0_7] : memref<8x128xf32, #tpu.memory_space<vmem>>, vector<1x128xf32>
    %c4 = arith.constant 4 : index
    %c0_8 = arith.constant 0 : index
    %6 = vector.load %arg4[%c4, %c0_8] : memref<8x128xf32, #tpu.memory_space<vmem>>, vector<1x128xf32>
    %c0_9 = arith.constant 0 : index
    %c0_10 = arith.constant 0 : index
    %7 = vector.load %arg3[%c0_9, %c0_10] : memref<648x128xf32, #tpu.memory_space<vmem>>, vector<128x128xf32>
    %cst = arith.constant dense<0.000000e+00> : vector<128x128xf32>
    %8 = tpu.matmul %0, %7, %cst {dimension_numbers = #tpu.dot_dimension_numbers<[1], [0], [0], [1], [0, 0, 1, 1], [], []>} : vector<128x128xf32>, vector<128x128xf32>, vector<128x128xf32> -> vector<128x128xf32>
    %9 = vector.broadcast %2 : vector<1x128xf32> to vector<128x128xf32>
    %10 = arith.addf %8, %9 : vector<128x128xf32>
    %11 = vector.extract_strided_slice %10 {offsets = [0, 8], sizes = [128, 2], strides = [1, 1]} : vector<128x128xf32> to vector<128x2xf32>
    %cst_11 = arith.constant 0.000000e+00 : f32
    %12 = vector.broadcast %cst_11 : f32 to vector<128x128xf32>
    %13 = arith.maximumf %10, %12 : vector<128x128xf32>
    %c128 = arith.constant 128 : index
    %c0_12 = arith.constant 0 : index
    %14 = vector.load %arg3[%c128, %c0_12] : memref<648x128xf32, #tpu.memory_space<vmem>>, vector<128x128xf32>
    %cst_13 = arith.constant dense<0.000000e+00> : vector<128x128xf32>
    %15 = tpu.matmul %13, %14, %cst_13 {dimension_numbers = #tpu.dot_dimension_numbers<[1], [0], [0], [1], [0, 0, 1, 1], [], []>} : vector<128x128xf32>, vector<128x128xf32>, vector<128x128xf32> -> vector<128x128xf32>
    %16 = vector.broadcast %3 : vector<1x128xf32> to vector<128x128xf32>
    %17 = arith.addf %15, %16 : vector<128x128xf32>
    %cst_14 = arith.constant 0.000000e+00 : f32
    %18 = vector.broadcast %cst_14 : f32 to vector<128x128xf32>
    %19 = arith.maximumf %17, %18 : vector<128x128xf32>
    %20 = vector.extract_strided_slice %19 {offsets = [0, 0], sizes = [128, 4], strides = [1, 1]} : vector<128x128xf32> to vector<128x4xf32>
    %21 = vector.broadcast %1 : vector<128x1xf32> to vector<128x4xf32>
    %22 = arith.mulf %20, %21 : vector<128x4xf32>
    %c256 = arith.constant 256 : index
    %c0_15 = arith.constant 0 : index
    %23 = vector.load %arg3[%c256, %c0_15] : memref<648x128xf32, #tpu.memory_space<vmem>>, vector<128x128xf32>
    %cst_16 = arith.constant dense<0.000000e+00> : vector<128x128xf32>
    %24 = tpu.matmul %19, %23, %cst_16 {dimension_numbers = #tpu.dot_dimension_numbers<[1], [0], [0], [1], [0, 0, 1, 1], [], []>} : vector<128x128xf32>, vector<128x128xf32>, vector<128x128xf32> -> vector<128x128xf32>
    %25 = vector.broadcast %4 : vector<1x128xf32> to vector<128x128xf32>
    %26 = arith.addf %24, %25 : vector<128x128xf32>
    %27 = vector.shape_cast %26 : vector<128x128xf32> to vector<16x8x128xf32>
    %28 = vector.shape_cast %1 : vector<128x1xf32> to vector<16x8x1xf32>
    %cst_17 = arith.constant dense<0.000000e+00> : vector<16x1xf32>
    %29 = vector.multi_reduction <add>, %28, %cst_17 [1] : vector<16x8x1xf32> to vector<16x1xf32>
    %cst_18 = arith.constant 1.000000e-07 : f32
    %30 = vector.broadcast %cst_18 : f32 to vector<16x1xf32>
    %31 = arith.maximumf %29, %30 : vector<16x1xf32>
    %32 = vector.broadcast %28 : vector<16x8x1xf32> to vector<16x8x128xf32>
    %33 = arith.mulf %27, %32 : vector<16x8x128xf32>
    %cst_19 = arith.constant dense<0.000000e+00> : vector<16x128xf32>
    %34 = vector.multi_reduction <add>, %33, %cst_19 [1] : vector<16x8x128xf32> to vector<16x128xf32>
    %35 = tpu.reciprocal %31 : vector<16x1xf32> -> vector<16x1xf32>
    %36 = vector.broadcast %35 : vector<16x1xf32> to vector<16x128xf32>
    %37 = arith.mulf %34, %36 : vector<16x128xf32>
    %c384 = arith.constant 384 : index
    %c0_20 = arith.constant 0 : index
    %38 = vector.load %arg3[%c384, %c0_20] : memref<648x128xf32, #tpu.memory_space<vmem>>, vector<128x128xf32>
    %cst_21 = arith.constant dense<0.000000e+00> : vector<16x128xf32>
    %39 = tpu.matmul %37, %38, %cst_21 {dimension_numbers = #tpu.dot_dimension_numbers<[1], [0], [0], [1], [0, 0, 1, 1], [], []>} : vector<16x128xf32>, vector<128x128xf32>, vector<16x128xf32> -> vector<16x128xf32>
    %40 = vector.extract_strided_slice %39 {offsets = [0, 0], sizes = [16, 2], strides = [1, 1]} : vector<16x128xf32> to vector<16x2xf32>
    %41 = vector.shape_cast %11 : vector<128x2xf32> to vector<16x8x2xf32>
    %42 = vector.shape_cast %40 : vector<16x2xf32> to vector<16x1x2xf32>
    %43 = vector.broadcast %42 : vector<16x1x2xf32> to vector<16x8x2xf32>
    %44 = arith.addf %41, %43 : vector<16x8x2xf32>
    %cst_22 = arith.constant dense<0xFF800000> : vector<16x2xf32>
    %45 = vector.multi_reduction <maximumf>, %44, %cst_22 [1] : vector<16x8x2xf32> to vector<16x2xf32>
    %46 = vector.shape_cast %45 : vector<16x2xf32> to vector<16x1x2xf32>
    %47 = vector.broadcast %46 : vector<16x1x2xf32> to vector<16x8x2xf32>
    %48 = arith.subf %44, %47 : vector<16x8x2xf32>
    %49 = math.exp %48 : vector<16x8x2xf32>
    %cst_23 = arith.constant dense<0.000000e+00> : vector<16x2xf32>
    %50 = vector.multi_reduction <add>, %49, %cst_23 [1] : vector<16x8x2xf32> to vector<16x2xf32>
    %51 = vector.shape_cast %50 : vector<16x2xf32> to vector<16x1x2xf32>
    %52 = tpu.reciprocal %51 : vector<16x1x2xf32> -> vector<16x1x2xf32>
    %53 = vector.broadcast %52 : vector<16x1x2xf32> to vector<16x8x2xf32>
    %54 = arith.mulf %49, %53 : vector<16x8x2xf32>
    %55 = vector.shape_cast %22 : vector<128x4xf32> to vector<16x8x4xf32>
    %56 = vector.extract_strided_slice %54 {offsets = [0, 0, 0], sizes = [16, 8, 1], strides = [1, 1, 1]} : vector<16x8x2xf32> to vector<16x8x1xf32>
    %57 = vector.broadcast %56 : vector<16x8x1xf32> to vector<16x8x4xf32>
    %58 = arith.mulf %57, %55 : vector<16x8x4xf32>
    %cst_24 = arith.constant dense<0.000000e+00> : vector<16x4xf32>
    %59 = vector.multi_reduction <add>, %58, %cst_24 [1] : vector<16x8x4xf32> to vector<16x4xf32>
    %60 = vector.extract_strided_slice %54 {offsets = [0, 0, 1], sizes = [16, 8, 1], strides = [1, 1, 1]} : vector<16x8x2xf32> to vector<16x8x1xf32>
    %61 = vector.broadcast %60 : vector<16x8x1xf32> to vector<16x8x4xf32>
    %62 = arith.mulf %61, %55 : vector<16x8x4xf32>
    %cst_25 = arith.constant dense<0.000000e+00> : vector<16x4xf32>
    %63 = vector.multi_reduction <add>, %62, %cst_25 [1] : vector<16x8x4xf32> to vector<16x4xf32>
    %64 = tpu.concatenate %59, %63 in 1 : vector<16x4xf32>, vector<16x4xf32> -> vector<16x8xf32>
    %c512 = arith.constant 512 : index
    %c0_26 = arith.constant 0 : index
    %65 = vector.load %arg3[%c512, %c0_26] : memref<648x128xf32, #tpu.memory_space<vmem>>, vector<8x128xf32>
    %cst_27 = arith.constant dense<0.000000e+00> : vector<16x128xf32>
    %66 = tpu.matmul %64, %65, %cst_27 {dimension_numbers = #tpu.dot_dimension_numbers<[1], [0], [0], [1], [0, 0, 1, 1], [], []>} : vector<16x8xf32>, vector<8x128xf32>, vector<16x128xf32> -> vector<16x128xf32>
    %67 = vector.broadcast %5 : vector<1x128xf32> to vector<16x128xf32>
    %68 = arith.addf %66, %67 : vector<16x128xf32>
    %cst_28 = arith.constant 0.000000e+00 : f32
    %69 = vector.broadcast %cst_28 : f32 to vector<16x128xf32>
    %70 = arith.maximumf %68, %69 : vector<16x128xf32>
    %c520 = arith.constant 520 : index
    %c0_29 = arith.constant 0 : index
    %71 = vector.load %arg3[%c520, %c0_29] : memref<648x128xf32, #tpu.memory_space<vmem>>, vector<128x128xf32>
    %cst_30 = arith.constant dense<0.000000e+00> : vector<16x128xf32>
    %72 = tpu.matmul %70, %71, %cst_30 {dimension_numbers = #tpu.dot_dimension_numbers<[1], [0], [0], [1], [0, 0, 1, 1], [], []>} : vector<16x128xf32>, vector<128x128xf32>, vector<16x128xf32> -> vector<16x128xf32>
    %73 = vector.broadcast %6 : vector<1x128xf32> to vector<16x128xf32>
    %74 = arith.addf %72, %73 : vector<16x128xf32>
    %cst_31 = arith.constant 0.000000e+00 : f32
    %75 = vector.broadcast %cst_31 : f32 to vector<16x128xf32>
    %76 = arith.maximumf %74, %75 : vector<16x128xf32>
    %c0_32 = arith.constant 0 : index
    %c0_33 = arith.constant 0 : index
    %77 = vector.load %arg5[%c0_32, %c0_33] : memref<16x128xf32, #tpu.memory_space<vmem>>, vector<16x128xf32>
    tpu.vector_store %arg5[%c0_32, %c0_33], %76 {strides = array<i32>} : memref<16x128xf32, #tpu.memory_space<vmem>>, vector<16x128xf32>,
    return
  }
  func.func @transform_0(%arg0: i32) -> (i32, i32) {
    %c0_i32 = arith.constant 0 : i32
    %c0_i32_0 = arith.constant 0 : i32
    return %arg0, %c0_i32 : i32, i32
  }
  func.func @transform_1(%arg0: i32) -> (i32, i32) {
    %c0_i32 = arith.constant 0 : i32
    %c0_i32_0 = arith.constant 0 : i32
    return %arg0, %c0_i32 : i32, i32
  }
  func.func @transform_2(%arg0: i32) -> (i32, i32) {
    %c0_i32 = arith.constant 0 : i32
    %c0_i32_0 = arith.constant 0 : i32
    %c0_i32_1 = arith.constant 0 : i32
    return %c0_i32, %c0_i32_0 : i32, i32
  }
  func.func @transform_3(%arg0: i32) -> (i32, i32) {
    %c0_i32 = arith.constant 0 : i32
    %c0_i32_0 = arith.constant 0 : i32
    %c0_i32_1 = arith.constant 0 : i32
    return %c0_i32, %c0_i32_0 : i32, i32
  }
  func.func @transform_4(%arg0: i32) -> (i32, i32) {
    %c0_i32 = arith.constant 0 : i32
    %c0_i32_0 = arith.constant 0 : i32
    return %arg0, %c0_i32 : i32, i32
  }
}

</mosaic_0001>

<bundles_post_ra>
// kernel: tpu_custom_call.1
= control target key start
LH: loop header
LB: loop body
LE: loop exit
PB: predicated region body
PF: predicated region fallthrough
CT: control target
= control target key end

     0   :  { %9 = vsyncpa [#allocation3], 0  ;;  %s3992_s0 = inlined_call_operand.vmem [shape: f32[128,128], index: 0, kind: input, shape index: {}]   ;;  %s3993_s1 = inlined_call_operand.vmem [shape: f32[128,1], index: 1, kind: input, shape index: {}]   ;;  %s3994_s2 = inlined_call_operand.hbm [shape: f32[648,128], index: 2, kind: input, shape index: {}]   ;;  %s3995_s3 = inlined_call_operand.vmem [shape: f32[8,128], index: 3, kind: input, shape index: {}]   ;;  %s3996_s4 = inlined_call_operand.hbm [shape: f32[16,128], index: 4, kind: output, shape index: {}]  }
   0x1   :  { %10 = vsyncpa [#allocation4], 0  ;;  %s3089_s15 = smov [#allocation2]   ;;  %s3041_s19 = scalar_lea.hbm %s3994_s2, 10368 }
   0x2   :  { %s20_s16 = sshll.u32 %s3089_s15, 4  ;;  %p3042_p0 = scmp.ne.s32.totalorder %s3994_s2, %s3041_s19  ;;  %s21_s16 = int_to_ptr.vmem [resolvable:$true] %s20_s16 }
   0x3   :  { %p3045_p1 = scmp.lt.u32.totalorder %s3041_s19, %s3994_s2 }
   0x5   :  { %p3047_p2 = pnand %p3045_p1, %p3042_p0 }
   0x7   :  { %3050 = shalt.err (!%p3047_p2)
}
   0x8   :  { %s3051_s24 = scalar_lea.vmem %s21_s16, 10368  ;;  %p3056_p4 = scmp.lt.s32.totalorder %s21_s16, %s21_s16 }
   0x9   :  { %p3052_p3 = scmp.ne.s32.totalorder %s21_s16, %s3051_s24  ;;  %p3057_p5 = scmp.lt.s32.totalorder %s3051_s24, %s3051_s24 }
   0xb   :  { %p3058_p6 = por %p3057_p5, %p3056_p4 }
   0xd   :  { %p3059_p7 = pnand %p3058_p6, %p3052_p3 }
   0xf   :  { %3062 = shalt.err (!%p3059_p7)
}
  0x10   :  { %s3090_s25 = smov 128   ;;  %s3091_s26 = smov 8  }
  0x11   :  { %26 = dma.hbm_to_vmem [thread:$0]  %s3994_s2, 10368, %s21_s16, [#allocation3], %s3090_s25, %s3090_s25, %s3091_s26  }
  0x12   :  { %3085 = dma.done.wait [#allocation3], 10368  }
  0x13   :  { %3086 = vsyncadd [#allocation3], 4294956928  ;;  %v69_v0 = vld [vmem:[#allocation2] sm:$0xff]  ;;  %v70_v1 = vld [vmem:[#allocation2 + $0x8] sm:$0xff]  ;;  %vm692_vm0 = vcmask 7168   ;;  %vm1077_vm1 = vcmask 1041409  }
  0x14   :  { %v71_v2 = vld [vmem:[#allocation2 + $0x10] sm:$0xff]  ;;  %v2769_v3 = vpack.c.bf16 %v70_v1, %v69_v0  ;;  %v72_v4 = vld [vmem:[#allocation2 + $0x18] sm:$0xff]  ;;  %v73_v6 = vld [vmem:[#allocation2 + $0x20] sm:$0xff]  ;;  %vm1079_vm2 = vcmask 1042434   ;;  %vm1081_vm3 = vcmask 1043459   ;;  %vm1083_vm4 = vcmask 1044484  }
  0x15   :  { %v2773_v5 = vpack.c.bf16 %v72_v4, %v71_v2  ;;  %v74_v7 = vld [vmem:[#allocation2 + $0x28] sm:$0xff]  ;;  %v32_v9 = vld [vmem:[%s3992_s0] sm:$0xff]  ;;  %v75_v10 = vld [vmem:[#allocation2 + $0x30] sm:$0xff]  ;;  %vm1085_vm5 = vcmask 1045509   ;;  %vm1087_vm6 = vcmask 1046534   ;;  %vm1089_vm7 = vcmask 1047559  }
  0x16   :  { %2770 = vmatprep.subr.bf16.mxu0 %v2769_v3  ;;  %v2777_v8 = vpack.c.bf16 %v74_v7, %v73_v6  ;;  %v76_v11 = vld [vmem:[#allocation2 + $0x38] sm:$0xff]  ;;  %2558 = vmatprep.mubr.f32.mxu0 %v32_v9  ;;  %v77_v13 = vld [vmem:[#allocation2 + $0x40] sm:$0xff]  ;;  %v78_v14 = vld [vmem:[#allocation2 + $0x48] sm:$0xff]  ;;  %vm1403_vm8 = vcmask 80960   ;;  %vm1804_vm9 = vcmask 31744   ;;  %s3096_s19 = smov 4  }
  0x17   :  { %2772 = vmatpush3.bf16.msra.mxu0 %v2769_v3  ;;  %v2781_v12 = vpack.c.bf16 %v76_v11, %v75_v10  ;;  %v250_v15 = vld [vmem:[#allocation2 + $0x80] sm:$0xff]  ;;  %v251_v16 = vld [vmem:[#allocation2 + $0x88] sm:$0xff]  ;;  %v252_v17 = vld [vmem:[#allocation2 + $0x90] sm:$0xff]  ;;  %v2785_v21 = vpack.c.bf16 %v78_v14, %v77_v13  ;;  %v3092_v3 = vmov 0   ;;  %vm2184_vm10 = vcmask 64512   ;;  %s3097_s24 = smov [#allocation5]  }
  0x18   :  { %2774 = vmatprep.subr.bf16.mxu0 %v2773_v5  ;;  %v253_v18 = vld [vmem:[#allocation2 + $0x98] sm:$0xff]  ;;  %v2801_v19 = vpack.c.bf16 %v251_v16, %v250_v15  ;;  %v254_v22 = vld [vmem:[#allocation2 + $0xa0] sm:$0xff]  ;;  %v255_v23 = vld [vmem:[#allocation2 + $0xa8] sm:$0xff]  ;;  %2939 = vset.pattern.permute.xlu1 %v3092_v3  ;;  %s2372_s27 = sshll.u32 %s3097_s24, 4  ;;  %s2373_s27 = int_to_ptr.vmem [resolvable:$true] %s2372_s27 }
  0x19   :  { %v2805_v20 = vpack.c.bf16 %v253_v18, %v252_v17  ;;  %v79_v24 = vld [vmem:[#allocation2 + $0x50] sm:$0xff]  ;;  %v80_v25 = vld [vmem:[#allocation2 + $0x58] sm:$0xff]  ;;  %v2809_v26 = vpack.c.bf16 %v255_v23, %v254_v22  ;;  %v81_v30 = vld [vmem:[#allocation2 + $0x60] sm:$0xff]  ;;  %2938 = vset.pattern.permute.xlu0 %v3092_v3  ;;  %s3063_s28 = scalar_lea.vmem %s2373_s27, 256  ;;  %p3068_p9 = scmp.lt.s32.totalorder %s2373_s27, %s2373_s27 }
  0x1a   :  { %2802 = vmatprep.subr.bf16.mxu1 %v2801_v19  ;;  %v2789_v27 = vpack.c.bf16 %v80_v25, %v79_v24  ;;  %v256_v28 = vld [vmem:[#allocation2 + $0xb0] sm:$0xff]  ;;  %v257_v29 = vld [vmem:[#allocation2 + $0xb8] sm:$0xff]  ;;  %v82_v31 = vld [vmem:[#allocation2 + $0x68] sm:$0xff]  ;;  %p3064_p8 = scmp.ne.s32.totalorder %s2373_s27, %s3063_s28  ;;  %p3069_p10 = scmp.lt.s32.totalorder %s3063_s28, %s3063_s28 }
  0x1b   :  { %2776 = vmatpush3.bf16.msra.mxu0 %v2773_v5  ;;  %2804 = vmatpush3.bf16.msra.mxu1 %v2801_v19  ;;  %v2813_v32 = vpack.c.bf16 %v257_v29, %v256_v28  ;;  %v2793_v33 = vpack.c.bf16 %v82_v31, %v81_v30  ;;  %v258_v34 = vld [vmem:[#allocation2 + $0xc0] sm:$0xff]  ;;  %v259_v35 = vld [vmem:[#allocation2 + $0xc8] sm:$0xff]  ;;  %v83_v36 = vld [vmem:[#allocation2 + $0x70] sm:$0xff] }
  0x1c   :  { %2778 = vmatprep.subr.bf16.mxu0 %v2777_v8  ;;  %2806 = vmatprep.subr.bf16.mxu1 %v2805_v20  ;;  %v84_v37 = vld [vmem:[#allocation2 + $0x78] sm:$0xff]  ;;  %v2817_v38 = vpack.c.bf16 %v259_v35, %v258_v34  ;;  %v260_v40 = vld [vmem:[#allocation2 + $0xd0] sm:$0xff]  ;;  %v262_v43 = vld [vmem:[#allocation2 + $0xe0] sm:$0xff]  ;;  %p3070_p11 = por %p3069_p10, %p3068_p9 }
  0x1d   :  { %v2797_v39 = vpack.c.bf16 %v84_v37, %v83_v36  ;;  %v261_v41 = vld [vmem:[#allocation2 + $0xd8] sm:$0xff]  ;;  %v263_v44 = vld [vmem:[#allocation2 + $0xe8] sm:$0xff]  ;;  %v34_v47 = vld [vmem:[%s3992_s0 + $0x10] sm:$0xff] }
  0x1e   :  { %v2821_v42 = vpack.c.bf16 %v261_v41, %v260_v40  ;;  %v33_v45 = vld [vmem:[%s3992_s0 + $0x8] sm:$0xff]  ;;  %v2825_v46 = vpack.c.bf16 %v263_v44, %v262_v43  ;;  %v35_v48 = vld [vmem:[%s3992_s0 + $0x18] sm:$0xff]  ;;  %v36_v49 = vld [vmem:[%s3992_s0 + $0x20] sm:$0xff]  ;;  %p3071_p12 = pnand %p3070_p11, %p3064_p8 }
  0x1f   :  { %2780 = vmatpush3.bf16.msra.mxu0 %v2777_v8  ;;  %2808 = vmatpush3.bf16.msra.mxu1 %v2805_v20  ;;  %v37_v50 = vld [vmem:[%s3992_s0 + $0x28] sm:$0xff]  ;;  %v38_v51 = vld [vmem:[%s3992_s0 + $0x30] sm:$0xff]  ;;  %v39_v52 = vld [vmem:[%s3992_s0 + $0x38] sm:$0xff] }
  0x20   :  { %2782 = vmatprep.subr.bf16.mxu0 %v2781_v12  ;;  %2810 = vmatprep.subr.bf16.mxu1 %v2809_v26  ;;  %v40_v53 = vld [vmem:[%s3992_s0 + $0x40] sm:$0xff]  ;;  %v41_v54 = vld [vmem:[%s3992_s0 + $0x48] sm:$0xff]  ;;  %v42_v55 = vld [vmem:[%s3992_s0 + $0x50] sm:$0xff] }
  0x21   :  { %v43_v56 = vld [vmem:[%s3992_s0 + $0x58] sm:$0xff]  ;;  %v44_v57 = vld [vmem:[%s3992_s0 + $0x60] sm:$0xff]  ;;  %v45_v58 = vld [vmem:[%s3992_s0 + $0x68] sm:$0xff] }
  0x22   :  { %v46_v59 = vld [vmem:[%s3992_s0 + $0x70] sm:$0xff]  ;;  %v47_v60 = vld [vmem:[%s3992_s0 + $0x78] sm:$0xff]  ;;  %v56_v1 = vld [vmem:[%s3993_s1 + $0x40] sm:$0xff] }
  0x23   :  { %2784 = vmatpush3.bf16.msra.mxu0 %v2781_v12  ;;  %2812 = vmatpush3.bf16.msra.mxu1 %v2809_v26  ;;  %v264_v61 = vld [vmem:[#allocation2 + $0xf0] sm:$0xff]  ;;  %v265_v62 = vld [vmem:[#allocation2 + $0xf8] sm:$0xff]  ;;  %v749_v5 = vsel %vm692_vm0, %v56_v1, 0.0  ;;  %v48_v7 = vld [vmem:[%s3993_s1] sm:$0xff] }
  0x24   :  { %2786 = vmatprep.subr.bf16.mxu0 %v2785_v21  ;;  %2814 = vmatprep.subr.bf16.mxu1 %v2813_v32  ;;  %v2829_v63 = vpack.c.bf16 %v265_v62, %v264_v61  ;;  %v50_v0 = vld [vmem:[%s3993_s1 + $0x10] sm:$0xff]  ;;  %v51_v2 = vld [vmem:[%s3993_s1 + $0x18] sm:$0xff]  ;;  %v52_v8 = vld [vmem:[%s3993_s1 + $0x20] sm:$0xff]  ;;  %v750_v10 = vrot.slane %v749_v5, 4  ;;  %v693_v12 = vsel %vm692_vm0, %v48_v7, 0.0 }
  0x25   :  { %v707_v4 = vsel %vm692_vm0, %v50_v0, 0.0  ;;  %v714_v6 = vsel %vm692_vm0, %v51_v2, 0.0  ;;  %443 = vperm.xlu1 %2939, %v50_v0   ;;  %433 = vperm.xlu0 %2938, %v48_v7   ;;  %v49_v13 = vld [vmem:[%s3993_s1 + $0x8] sm:$0xff]  ;;  %v694_v15 = vrot.slane %v693_v12, 4  ;;  %v721_v16 = vsel %vm692_vm0, %v52_v8, 0.0  ;;  %v3217_v23 = vld [vmem:[%s3993_s1 + $0x30] sm:$0xff] }
  0x26   :  { %v708_v9 = vrot.slane %v707_v4, 4  ;;  %v715_v11 = vrot.slane %v714_v6, 4  ;;  %v53_v14 = vld [vmem:[%s3993_s1 + $0x28] sm:$0xff]  ;;  %v700_v17 = vsel %vm692_vm0, %v49_v13, 0.0  ;;  %v751_v20 = vadd.f32 %v750_v10, %v749_v5  ;;  %v59_v61 = vld [vmem:[%s3993_s1 + $0x58] sm:$0xff] }
  0x27   :  { %2788 = vmatpush3.bf16.msra.mxu0 %v2785_v21  ;;  %2816 = vmatpush3.bf16.msra.mxu1 %v2813_v32  ;;  %v728_v18 = vsel %vm692_vm0, %v53_v14, 0.0  ;;  %v722_v22 = vrot.slane %v721_v16, 4  ;;  %v695_v24 = vadd.f32 %v694_v15, %v693_v12  ;;  %v701_v25 = vrot.slane %v700_v17, 4  ;;  %v57_v36 = vld [vmem:[%s3993_s1 + $0x48] sm:$0xff] }
  0x28   :  { %2790 = vmatprep.subr.bf16.mxu0 %v2789_v27  ;;  %2818 = vmatprep.subr.bf16.mxu1 %v2817_v38  ;;  %v709_v19 = vadd.f32 %v708_v9, %v707_v4  ;;  %v716_v21 = vadd.f32 %v715_v11, %v714_v6  ;;  %v729_v26 = vrot.slane %v728_v18, 4  ;;  %v752_v29 = vrot.slane %v751_v20, 2  ;;  %v60_v9 = vld [vmem:[%s3993_s1 + $0x60] sm:$0xff] }
  0x29   :  { %473 = vperm.xlu1 %2939, %v56_v1   ;;  %v723_v31 = vadd.f32 %v722_v22, %v721_v16  ;;  %438 = vperm.xlu0 %2938, %v49_v13   ;;  %v696_v32 = vrot.slane %v695_v24, 2  ;;  %v756_v0 = vsel %vm692_vm0, %v57_v36, 0.0  ;;  %v770_v13 = vsel %vm692_vm0, %v59_v61, 0.0 }
  0x2a   :  { %v710_v28 = vrot.slane %v709_v19, 2  ;;  %v717_v30 = vrot.slane %v716_v21, 2  ;;  %v730_v34 = vadd.f32 %v729_v26, %v728_v18  ;;  %v757_v6 = vrot.slane %v756_v0, 4  ;;  %v61_v18 = vld [vmem:[%s3993_s1 + $0x68] sm:$0xff] }
  0x2b   :  { %2792 = vmatpush3.bf16.msra.mxu0 %v2789_v27  ;;  %2820 = vmatpush3.bf16.msra.mxu1 %v2817_v38  ;;  %v735_v27 = vsel %vm692_vm0, %v3217_v23, 0.0  ;;  %v753_v38 = vadd.f32 %v752_v29, %v751_v20  ;;  %v724_v40 = vrot.slane %v723_v31, 2  ;;  %v697_v41 = vadd.f32 %v696_v32, %v695_v24  ;;  %v63_v29 = vld [vmem:[%s3993_s1 + $0x78] sm:$0xff] }
  0x2c   :  { %2794 = vmatprep.subr.bf16.mxu0 %v2793_v33  ;;  %2822 = vmatprep.subr.bf16.mxu1 %v2821_v42  ;;  %v736_v35 = vrot.slane %v735_v27, 4  ;;  %v711_v37 = vadd.f32 %v710_v28, %v709_v19  ;;  %v731_v43 = vrot.slane %v730_v34, 2  ;;  %v777_v20 = vsel %vm692_vm0, %v60_v9, 0.0 }
  0x2d   :  { %448 = vperm.xlu1 %2939, %v51_v2   ;;  %478 = vperm.xlu0 %2938, %v57_v36   ;;  %v798_v32 = vsel %vm692_vm0, %v63_v29, 0.0  ;;  %v62_v36 = vld [vmem:[%s3993_s1 + $0x70] sm:$0xff] }
  0x2e   :  { %v737_v44 = vadd.f32 %v736_v35, %v735_v27  ;;  %v778_v27 = vrot.slane %v777_v20, 4  ;;  %v799_v35 = vrot.slane %v798_v32, 4 }
  0x2f   :  { %2796 = vmatpush3.bf16.msra.mxu0 %v2793_v33  ;;  %2824 = vmatpush3.bf16.msra.mxu1 %v2821_v42  ;;  %v702_v33 = vadd.f32 %v701_v25, %v700_v17  ;;  %v771_v17 = vrot.slane %v770_v13, 4 }
  0x30   :  { %2798 = vmatprep.subr.bf16.mxu0 %v2797_v39  ;;  %2826 = vmatprep.subr.bf16.mxu1 %v2825_v46 }
  0x31   :  { %v703_v42 = vrot.slane %v702_v33, 2  ;;  %453 = vperm.xlu1 %2939, %v52_v8   ;;  %v772_v25 = vadd.f32 %v771_v17, %v770_v13 }
  0x33   :  { %2800 = vmatpush3.bf16.msra.mxu0 %v2797_v39  ;;  %2828 = vmatpush3.bf16.msra.mxu1 %v2825_v46  ;;  %v718_v39 = vadd.f32 %v717_v30, %v716_v21  ;;  %v754_v46 = vrot.slane %v753_v38, 1  ;;  %v784_v21 = vsel %vm692_vm0, %v61_v18, 0.0 }
  0x34   :  { %2830 = vmatprep.subr.bf16.mxu1 %v2829_v63  ;;  %v785_v28 = vrot.slane %v784_v21, 4 }
  0x35   :  { %458 = vperm.xlu1 %2939, %v53_v14   ;;  %v758_v14 = vadd.f32 %v757_v6, %v756_v0  ;;  %v530_v0 = vld [vmem:[#allocation2 + $0x118] sm:$0xff] }
  0x36   :  { %2559 = vmatmul.mubr.f32.vlgmr.msra.gmra.mrb[0].mxu0 %v33_v45  ;;  %v712_v45 = vrot.slane %v711_v37, 1 }
  0x37   :  { %2561 = vmatprep.mubr.f32.mxu0 %v34_v47  ;;  %2832 = vmatpush3.bf16.msra.mxu1 %v2829_v63  ;;  %v719_v47 = vrot.slane %v718_v39, 1  ;;  %v759_v22 = vrot.slane %v758_v14, 2 }
  0x39   :  { %463 = vperm.xlu1 %2939, %v3217_v23   ;;  %v760_v30 = vadd.f32 %v759_v22, %v758_v14  ;;  %v786_v23 = vadd.f32 %v785_v28, %v784_v21 }
  0x3a   :  { %2562 = vmatmul.mubr.f32.gmra.mrb[2].mxu0 %v35_v48  ;;  %v698_v48 = vrot.slane %v697_v41, 1 }
  0x3b   :  { %2564 = vmatprep.mubr.f32.mxu0 %v36_v49  ;;  %v704_v49 = vadd.f32 %v703_v42, %v702_v33 }
  0x3e   :  { %2565 = vmatmul.mubr.f32.gmra.mrb[4].mxu0 %v37_v50  ;;  %v58_v50 = vld [vmem:[%s3993_s1 + $0x50] sm:$0xff] }
  0x3f   :  { %2567 = vmatprep.mubr.f32.mxu0 %v38_v51  ;;  %v725_v51 = vadd.f32 %v724_v40, %v723_v31  ;;  %483 = vperm.xlu0 %2938, %v58_v50   ;;  %v763_v8 = vsel %vm692_vm0, %v58_v50, 0.0  ;;  %v773_v31 = vrot.slane %v772_v25, 2  ;;  %v791_v40 = vsel %vm692_vm0, %v62_v36, 0.0 }
  0x40   :  { %v764_v12 = vrot.slane %v763_v8, 4 }
  0x41   :  { %v726_v62 = vrot.slane %v725_v51, 1 }
  0x42   :  { %2568 = vmatmul.mubr.f32.gmra.mrb[6].mxu0 %v39_v52  ;;  %v732_v52 = vadd.f32 %v731_v43, %v730_v34  ;;  %v765_v19 = vadd.f32 %v764_v12, %v763_v8  ;;  %v779_v34 = vadd.f32 %v778_v27, %v777_v20  ;;  %v787_v43 = vrot.slane %v786_v23, 2  ;;  %v534_v20 = vld [vmem:[#allocation2 + $0x138] sm:$0xff] }
  0x43   :  { %2570 = vmatprep.mubr.f32.mxu0 %v40_v53  ;;  %v713_v53 = vadd.f32 %v712_v45, %v711_v37  ;;  %488 = vperm.xlu0 %2938, %v59_v61   ;;  %v3245_v15 = vadd.f32 %v726_v62, %v725_v51  ;;  %v761_v37 = vrot.slane %v760_v30, 1 }
  0x44   :  { %v733_v63 = vrot.slane %v732_v52, 1  ;;  %v766_v26 = vrot.slane %v765_v19, 2  ;;  %v780_v42 = vrot.slane %v779_v34, 2 }
  0x45   :  { %v807_v2 = vmax.f32 %v713_v53, 1e-07  ;;  %v527_v53 = vld [vmem:[#allocation2 + $0x100] sm:$0xff] }
  0x46   :  { %2571 = vmatmul.mubr.f32.gmra.mrb[8].mxu0 %v41_v54  ;;  %v699_v54 = vadd.f32 %v698_v48, %v697_v41  ;;  %v3247_v16 = vadd.f32 %v733_v63, %v732_v52  ;;  %v767_v33 = vadd.f32 %v766_v26, %v765_v19  ;;  %v792_v48 = vrot.slane %v791_v40, 4  ;;  %v529_v63 = vld [vmem:[#allocation2 + $0x110] sm:$0xff] }
  0x47   :  { %2573 = vmatprep.mubr.f32.mxu0 %v42_v55  ;;  %v705_v55 = vrot.slane %v704_v49, 1  ;;  %493 = vperm.xlu0 %2938, %v60_v9   ;;  %v781_v51 = vadd.f32 %v780_v42, %v779_v34  ;;  %v788_v52 = vadd.f32 %v787_v43, %v786_v23 }
  0x48   :  { %v805_v3 = vmax.f32 %v699_v54, 1e-07  ;;  %v768_v41 = vrot.slane %v767_v33, 1  ;;  %v528_v54 = vld [vmem:[#allocation2 + $0x108] sm:$0xff] }
  0x49   :  { %v782_v61 = vrot.slane %v781_v51, 1  ;;  %v789_v9 = vrot.slane %v788_v52, 1 }
  0x4a   :  { %2574 = vmatmul.mubr.f32.gmra.mrb[10].mxu0 %v43_v56  ;;  %v738_v56 = vrot.slane %v737_v44, 2  ;;  %2945 = vrcp.f32 %v805_v3  ;;  %v769_v50 = vadd.f32 %v768_v41, %v767_v33  ;;  %v2833_v3 = vpack.c.bf16 %v528_v54, %v527_v53  ;;  %v2384_v54 = vld [vmem:[%s3995_s3] ss:$0 sm:$0xff] }
  0x4b   :  { %2576 = vmatprep.mubr.f32.mxu0 %v44_v57  ;;  %v755_v57 = vadd.f32 %v754_v46, %v753_v38  ;;  %498 = vperm.xlu0 %2938, %v61_v18   ;;  %v762_v46 = vadd.f32 %v761_v37, %v760_v30  ;;  %v783_v12 = vadd.f32 %v782_v61, %v781_v51  ;;  %v536_v30 = vld [vmem:[#allocation2 + $0x148] sm:$0xff] }
  0x4c   :  { %v3237_v4 = vadd.f32 %v738_v56, %v737_v44  ;;  %v800_v44 = vadd.f32 %v799_v35, %v798_v32  ;;  %2834 = vmatprep.subr.bf16.mxu0 %v2833_v3  ;;  %v790_v22 = vadd.f32 %v789_v9, %v788_v52 }
  0x4d   :  { %v813_v10 = vmax.f32 %v755_v57, 1e-07  ;;  %v793_v57 = vadd.f32 %v792_v48, %v791_v40  ;;  %2836 = vmatpush3.bf16.msra.mxu0 %v2833_v3  ;;  %v817_v21 = vmax.f32 %v783_v12, 1e-07 }
  0x4e   :  { %2577 = vmatmul.mubr.f32.gmra.mrb[12].mxu0 %v45_v58  ;;  %v3227_v58 = vadd.f32 %v719_v47, %v718_v39  ;;  %v774_v39 = vadd.f32 %v773_v31, %v772_v25  ;;  %v740_v45 = vrot.slane %v3237_v4, 1  ;;  %v801_v62 = vrot.slane %v800_v44, 2 }
  0x4f   :  { %2579 = vmatprep.mubr.f32.mxu0 %v46_v59  ;;  %v706_v59 = vadd.f32 %v705_v55, %v704_v49  ;;  %v809_v49 = vmax.f32 %v3245_v15, 1e-07  ;;  %v814_v55 = vmax.f32 %v762_v46, 1e-07  ;;  %503 = vperm.xlu0 %2938, %v62_v36   ;;  %v2837_v15 = vpack.c.bf16 %v530_v0, %v529_v63  ;;  %v540_v46 = vld [vmem:[#allocation2 + $0x168] sm:$0xff] }
  0x50   :  { %v808_v11 = vmax.f32 %v3227_v58, 1e-07  ;;  %v775_v47 = vrot.slane %v774_v39, 1  ;;  %v741_v14 = vadd.f32 %v740_v45, %v3237_v4  ;;  %v802_v18 = vadd.f32 %v801_v62, %v800_v44  ;;  %v539_v45 = vld [vmem:[#allocation2 + $0x160] sm:$0xff] }
  0x51   :  { %v806_v5 = vmax.f32 %v706_v59, 1e-07  ;;  %2838 = vmatprep.subr.bf16.mxu0 %v2837_v15  ;;  %v818_v32 = vmax.f32 %v790_v22, 1e-07  ;;  %v2857_v48 = vpack.c.bf16 %v540_v46, %v539_v45 }
  0x52   :  { %2580 = vmatmul.mubr.f32.gmra.mrb[14].mxu0 %v47_v60  ;;  %v55_v60 = vld [vmem:[%s3993_s1 + $0x38] sm:$0xff]  ;;  %v776_v56 = vadd.f32 %v775_v47, %v774_v39  ;;  %v811_v25 = vmax.f32 %v741_v14, 1e-07  ;;  %v803_v27 = vrot.slane %v802_v18, 1 }
  0x53   :  { %v742_v1 = vsel %vm692_vm0, %v55_v60, 0.0  ;;  %2947 = vrcp.f32 %v806_v5  ;;  %468 = vperm.xlu1 %2939, %v55_v60   ;;  %v815_v60 = vmax.f32 %v769_v50, 1e-07  ;;  %v531_v5 = vld [vmem:[#allocation2 + $0x120] sm:$0xff]  ;;  %2840 = vmatpush3.bf16.msra.mxu0 %v2837_v15  ;;  %v538_v39 = vld [vmem:[#allocation2 + $0x158] sm:$0xff] }
  0x54   :  { %v743_v7 = vrot.slane %v742_v1, 4  ;;  %2949 = vrcp.f32 %v807_v2  ;;  %v2946_v58 = vpop.eup %2945  ;;  %v794_v2 = vrot.slane %v793_v57, 2  ;;  %v816_v8 = vmax.f32 %v776_v56, 1e-07 }
  0x55   :  { %2951 = vrcp.f32 %v813_v10  ;;  %v532_v10 = vld [vmem:[#allocation2 + $0x128] sm:$0xff]  ;;  %951 = vperm.xlu0 %2938, %v2946_v58   ;;  %v804_v23 = vadd.f32 %v803_v27, %v802_v18 }
  0x56   :  { %v744_v24 = vadd.f32 %v743_v7, %v742_v1  ;;  %2953 = vrcp.f32 %v808_v11  ;;  %v810_v7 = vmax.f32 %v3247_v16, 1e-07  ;;  %v795_v13 = vadd.f32 %v794_v2, %v793_v57  ;;  %v533_v16 = vld [vmem:[#allocation2 + $0x130] sm:$0xff] }
  0x57   :  { %508 = vperm.xlu1 %2939, %v63_v29   ;;  %2955 = vrcp.f32 %v814_v55  ;;  %v2841_v19 = vpack.c.bf16 %v532_v10, %v531_v5  ;;  %v2845_v28 = vpack.c.bf16 %v534_v20, %v533_v16  ;;  %v535_v29 = vld [vmem:[#allocation2 + $0x140] sm:$0xff]  ;;  %v820_v41 = vmax.f32 %v804_v23, 1e-07 }
  0x58   :  { %v745_v38 = vrot.slane %v744_v24, 2  ;;  %2957 = vrcp.f32 %v815_v60  ;;  %v2849_v36 = vpack.c.bf16 %v536_v30, %v535_v29 }
  0x59   :  { %2959 = vrcp.f32 %v809_v49  ;;  %2842 = vmatprep.subr.bf16.mxu0 %v2841_v19 }
  0x5a   :  { %v746_v59 = vadd.f32 %v745_v38, %v744_v24  ;;  %2961 = vrcp.f32 %v816_v8  ;;  %v796_v24 = vrot.slane %v795_v13, 1  ;;  %2844 = vmatpush3.bf16.msra.mxu0 %v2841_v19  ;;  %v537_v38 = vld [vmem:[#allocation2 + $0x150] sm:$0xff] }
  0x5b   :  { %2963 = vrcp.f32 %v810_v7  ;;  %2846 = vmatprep.subr.bf16.mxu0 %v2845_v28  ;;  %v2853_v43 = vpack.c.bf16 %v538_v39, %v537_v38  ;;  %v541_v39 = vld [vmem:[#allocation2 + $0x170] sm:$0xff] }
  0x5c   :  { %v747_v17 = vrot.slane %v746_v59, 1  ;;  %2965 = vrcp.f32 %v817_v21  ;;  %v797_v33 = vadd.f32 %v796_v24, %v795_v13 }
  0x5d   :  { %v2948_v1 = vpop.eup %2947  ;;  %2967 = vrcp.f32 %v811_v25 }
  0x5e   :  { %v2950_v6 = vpop.eup %2949  ;;  %956 = vperm.xlu1 %2939, %v2948_v1   ;;  %v748_v26 = vadd.f32 %v747_v17, %v746_v59  ;;  %2969 = vrcp.f32 %v818_v32  ;;  %v819_v40 = vmax.f32 %v797_v33, 1e-07  ;;  %2848 = vmatpush3.bf16.msra.mxu0 %v2845_v28 }
  0x5f   :  { %v2952_v11 = vpop.eup %2951  ;;  %961 = vperm.xlu0 %2938, %v2950_v6   ;;  %2850 = vmatprep.subr.bf16.mxu0 %v2849_v36 }
  0x60   :  { %v2954_v4 = vpop.eup %2953  ;;  %v812_v34 = vmax.f32 %v748_v26, 1e-07 }
  0x61   :  { %v2956_v31 = vpop.eup %2955 }
  0x62   :  { %991 = vperm.xlu1 %2939, %v2952_v11   ;;  %v2958_v35 = vpop.eup %2957  ;;  %2971 = vrcp.f32 %v812_v34  ;;  %2852 = vmatpush3.bf16.msra.mxu0 %v2849_v36 }
  0x63   :  { %996 = vperm.xlu0 %2938, %v2956_v31   ;;  %v2960_v37 = vpop.eup %2959  ;;  %2973 = vrcp.f32 %v819_v40  ;;  %2854 = vmatprep.subr.bf16.mxu0 %v2853_v43  ;;  %v542_v40 = vld [vmem:[#allocation2 + $0x178] sm:$0xff] }
  0x64   :  { %v2962_v42 = vpop.eup %2961  ;;  %2975 = vrcp.f32 %v820_v41  ;;  %v2861_v41 = vpack.c.bf16 %v542_v40, %v541_v39 }
  0x65   :  { %v2964_v44 = vpop.eup %2963 }
  0x66   :  { %966 = vperm.xlu1 %2939, %v2954_v4   ;;  %v2966_v47 = vpop.eup %2965  ;;  %2856 = vmatpush3.bf16.msra.mxu0 %v2853_v43 }
  0x67   :  { %1001 = vperm.xlu0 %2938, %v2958_v35   ;;  %v2968_v49 = vpop.eup %2967  ;;  %2858 = vmatprep.subr.bf16.mxu0 %v2857_v48 }
  0x68   :  { %v2970_v50 = vpop.eup %2969 }
  0x6a   :  { %971 = vperm.xlu1 %2939, %v2960_v37   ;;  %2860 = vmatpush3.bf16.msra.mxu0 %v2857_v48 }
  0x6b   :  { %1006 = vperm.xlu0 %2938, %v2962_v42   ;;  %2862 = vmatprep.subr.bf16.mxu0 %v2861_v41  ;;  %v2385_v42 = vld [vmem:[%s3995_s3 + $0x1] ss:$0 sm:$0xff] }
  0x6c   :  { %v2972_v51 = vpop.eup %2971 }
  0x6d   :  { %v2974_v52 = vpop.eup %2973 }
  0x6e   :  { %976 = vperm.xlu1 %2939, %v2964_v44   ;;  %v2976_v53 = vpop.eup %2975  ;;  %2864 = vmatpush3.bf16.msra.mxu0 %v2861_v41 }
  0x6f   :  { %1011 = vperm.xlu0 %2938, %v2966_v47  }
  0x72   :  { %981 = vperm.xlu1 %2939, %v2968_v49  }
  0x73   :  { %1016 = vperm.xlu0 %2938, %v2970_v50  }
  0x76   :  { %986 = vperm.xlu1 %2939, %v2972_v51  }
  0x77   :  { %1021 = vperm.xlu0 %2938, %v2974_v52  }
  0x7a   :  { %1026 = vperm.xlu1 %2939, %v2976_v53  }
 0x109   :  { %v2560_v55 = vpop.f32.mrb[0].mxu0 }
 0x10a   :  { %v3270_v56 = vadd.f32 %v2560_v55, %v2384_v54  ;;  %v155_v57 = vpop.f32.mrb[1].mxu0 }
 0x10b   :  { %v3272_v58 = vadd.f32 %v2384_v54, %v155_v57 }
 0x10c   :  { %v235_v61 = vmax.f32 %v3270_v56, 0.0 }
 0x10d   :  { %v2563_v59 = vpop.f32.mrb[2].mxu0  ;;  %v234_v60 = vmax.f32 %v3272_v58, 0.0 }
 0x10e   :  { %v3276_v62 = vadd.f32 %v2563_v59, %v2384_v54  ;;  %v165_v63 = vpop.f32.mrb[3].mxu0 }
 0x10f   :  { %v3278_v0 = vadd.f32 %v2384_v54, %v165_v63  ;;  %2614 = vmatprep.mubr.f32.mxu1 %v234_v60 }
 0x110   :  { %2615 = vmatmul.mubr.f32.vlgmr.msra.gmra.mrb[0].mxu1 %v235_v61  ;;  %v237_v3 = vmax.f32 %v3276_v62, 0.0 }
 0x111   :  { %v236_v1 = vmax.f32 %v3278_v0, 0.0  ;;  %v2566_v2 = vpop.f32.mrb[4].mxu0 }
 0x112   :  { %v3282_v5 = vadd.f32 %v2566_v2, %v2384_v54  ;;  %v175_v6 = vpop.f32.mrb[5].mxu0 }
 0x113   :  { %v3284_v7 = vadd.f32 %v2384_v54, %v175_v6  ;;  %2617 = vmatprep.mubr.f32.mxu1 %v236_v1 }
 0x114   :  { %2618 = vmatmul.mubr.f32.gmra.mrb[2].mxu1 %v237_v3  ;;  %v239_v10 = vmax.f32 %v3282_v5, 0.0 }
 0x115   :  { %v238_v8 = vmax.f32 %v3284_v7, 0.0  ;;  %v2569_v9 = vpop.f32.mrb[6].mxu0 }
 0x116   :  { %v3288_v11 = vadd.f32 %v2569_v9, %v2384_v54  ;;  %v185_v12 = vpop.f32.mrb[7].mxu0 }
 0x117   :  { %v3290_v13 = vadd.f32 %v2384_v54, %v185_v12  ;;  %2620 = vmatprep.mubr.f32.mxu1 %v238_v8 }
 0x118   :  { %2621 = vmatmul.mubr.f32.gmra.mrb[4].mxu1 %v239_v10  ;;  %v241_v17 = vmax.f32 %v3288_v11, 0.0 }
 0x119   :  { %v240_v15 = vmax.f32 %v3290_v13, 0.0  ;;  %v2572_v14 = vpop.f32.mrb[8].mxu0 }
 0x11a   :  { %v3294_v18 = vadd.f32 %v2572_v14, %v2384_v54  ;;  %v195_v19 = vpop.f32.mrb[9].mxu0 }
 0x11b   :  { %v3296_v16 = vadd.f32 %v2384_v54, %v195_v19  ;;  %2623 = vmatprep.mubr.f32.mxu1 %v240_v15 }
 0x11c   :  { %2624 = vmatmul.mubr.f32.gmra.mrb[6].mxu1 %v241_v17  ;;  %v243_v22 = vmax.f32 %v3294_v18, 0.0 }
 0x11d   :  { %v242_v20 = vmax.f32 %v3296_v16, 0.0  ;;  %v2575_v21 = vpop.f32.mrb[10].mxu0 }
 0x11e   :  { %v3300_v24 = vadd.f32 %v2575_v21, %v2384_v54  ;;  %v205_v25 = vpop.f32.mrb[11].mxu0 }
 0x11f   :  { %v3302_v26 = vadd.f32 %v2384_v54, %v205_v25  ;;  %2626 = vmatprep.mubr.f32.mxu1 %v242_v20 }
 0x120   :  { %2627 = vmatmul.mubr.f32.gmra.mrb[8].mxu1 %v243_v22  ;;  %v245_v28 = vmax.f32 %v3300_v24, 0.0 }
 0x121   :  { %v244_v27 = vmax.f32 %v3302_v26, 0.0  ;;  %v2578_v4 = vpop.f32.mrb[12].mxu0 }
 0x122   :  { %v3306_v29 = vadd.f32 %v2578_v4, %v2384_v54  ;;  %v215_v30 = vpop.f32.mrb[13].mxu0 }
 0x123   :  { %v3308_v31 = vadd.f32 %v2384_v54, %v215_v30  ;;  %2629 = vmatprep.mubr.f32.mxu1 %v244_v27 }
 0x124   :  { %2630 = vmatmul.mubr.f32.gmra.mrb[10].mxu1 %v245_v28  ;;  %v247_v34 = vmax.f32 %v3306_v29, 0.0 }
 0x125   :  { %v246_v32 = vmax.f32 %v3308_v31, 0.0  ;;  %v2581_v33 = vpop.f32.mrb[14].mxu0 }
 0x126   :  { %v3312_v23 = vadd.f32 %v2581_v33, %v2384_v54  ;;  %v225_v35 = vpop.f32.mrb[15].mxu0 }
 0x127   :  { %v3314_v36 = vadd.f32 %v2384_v54, %v225_v35  ;;  %2632 = vmatprep.mubr.f32.mxu1 %v246_v32 }
 0x128   :  { %2633 = vmatmul.mubr.f32.gmra.mrb[12].mxu1 %v247_v34  ;;  %v249_v38 = vmax.f32 %v3312_v23, 0.0 }
 0x129   :  { %4042 = vst [vmem:[#allocation8_spill] sm:$0xff] %v3314_v36  ;;  %v248_v37 = vmax.f32 %v3314_v36, 0.0 }
 0x12b   :  { %2635 = vmatprep.mubr.f32.mxu1 %v248_v37 }
 0x12c   :  { %2636 = vmatmul.mubr.f32.gmra.mrb[14].mxu1 %v249_v38 }
 0x1e3   :  { %v2616_v43 = vpop.f32.mrb[0].mxu1 }
 0x1e4   :  { %v3321_v44 = vadd.f32 %v2616_v43, %v2385_v42  ;;  %v336_v45 = vpop.f32.mrb[1].mxu1 }
 0x1e5   :  { %v3323_v46 = vadd.f32 %v2385_v42, %v336_v45  ;;  %v1045_v45 = vld [vmem:[#allocation2 + $0x180] sm:$0xff] }
 0x1e6   :  { %4043 = vst [vmem:[#allocation9_spill] sm:$0xff] %v3321_v44  ;;  %v4007_v49 = vmax.f32 %v3321_v44, 0.0 }
 0x1e7   :  { %4044 = vst [vmem:[#allocation10_spill] sm:$0xff] %v3323_v46  ;;  %v4011_v47 = vmax.f32 %v3323_v46, 0.0  ;;  %v2619_v48 = vpop.f32.mrb[2].mxu1 }
 0x1e8   :  { %v3327_v50 = vadd.f32 %v2619_v48, %v2385_v42  ;;  %v346_v51 = vpop.f32.mrb[3].mxu1  ;;  %v1046_v48 = vld [vmem:[#allocation2 + $0x188] sm:$0xff] }
 0x1e9   :  { %v3329_v52 = vadd.f32 %v2385_v42, %v346_v51  ;;  %2670 = vmatprep.mubr.f32.mxu0 %v4011_v47  ;;  %v1047_v51 = vld [vmem:[#allocation2 + $0x190] sm:$0xff] }
 0x1ea   :  { %4045 = vst [vmem:[#allocation11_spill] sm:$0xff] %v3327_v50  ;;  %2671 = vmatmul.mubr.f32.vlgmr.msra.gmra.mrb[16].mxu0 %v4007_v49  ;;  %v4006_v55 = vmax.f32 %v3327_v50, 0.0 }
 0x1eb   :  { %4046 = vst [vmem:[#allocation12_spill] sm:$0xff] %v3329_v52  ;;  %v4004_v53 = vmax.f32 %v3329_v52, 0.0  ;;  %v2622_v54 = vpop.f32.mrb[4].mxu1 }
 0x1ec   :  { %v3337_v57 = vadd.f32 %v2622_v54, %v2385_v42  ;;  %v356_v59 = vpop.f32.mrb[5].mxu1  ;;  %v1048_v54 = vld [vmem:[#allocation2 + $0x198] sm:$0xff] }
 0x1ed   :  { %v3339_v60 = vadd.f32 %v2385_v42, %v356_v59  ;;  %2673 = vmatprep.mubr.f32.mxu0 %v4004_v53  ;;  %v2869_v59 = vpack.c.bf16 %v1048_v54, %v1047_v51  ;;  %v1058_v51 = vld [vmem:[#allocation2 + $0x1e8] sm:$0xff] }
 0x1ee   :  { %4047 = vst [vmem:[#allocation13_spill] sm:$0xff] %v3337_v57  ;;  %2674 = vmatmul.mubr.f32.gmra.mrb[18].mxu0 %v4006_v55  ;;  %v4005_v1 = vmax.f32 %v3337_v57, 0.0 }
 0x1ef   :  { %4048 = vst [vmem:[#allocation14_spill] sm:$0xff] %v3339_v60  ;;  %v4009_v61 = vmax.f32 %v3339_v60, 0.0  ;;  %v2625_v63 = vpop.f32.mrb[6].mxu1 }
 0x1f0   :  { %v3347_v2 = vadd.f32 %v2625_v63, %v2385_v42  ;;  %v366_v3 = vpop.f32.mrb[7].mxu1  ;;  %v1049_v63 = vld [vmem:[#allocation2 + $0x1a0] sm:$0xff] }
 0x1f1   :  { %v3349_v6 = vadd.f32 %v2385_v42, %v366_v3  ;;  %2676 = vmatprep.mubr.f32.mxu0 %v4009_v61  ;;  %v1050_v3 = vld [vmem:[#allocation2 + $0x1a8] sm:$0xff] }
 0x1f2   :  { %4049 = vst [vmem:[#allocation15_spill] sm:$0xff] %v3347_v2  ;;  %2677 = vmatmul.mubr.f32.gmra.mrb[20].mxu0 %v4005_v1  ;;  %v4003_v10 = vmax.f32 %v3347_v2, 0.0 }
 0x1f3   :  { %4050 = vst [vmem:[#allocation16_spill] sm:$0xff] %v3349_v6  ;;  %v4001_v8 = vmax.f32 %v3349_v6, 0.0  ;;  %v2628_v9 = vpop.f32.mrb[8].mxu1 }
 0x1f4   :  { %v3357_v12 = vadd.f32 %v2628_v9, %v2385_v42  ;;  %v376_v15 = vpop.f32.mrb[9].mxu1  ;;  %v2873_v9 = vpack.c.bf16 %v1050_v3, %v1049_v63  ;;  %v1060_v63 = vld [vmem:[#allocation2 + $0x1f8] sm:$0xff] }
 0x1f5   :  { %v3359_v14 = vadd.f32 %v2385_v42, %v376_v15  ;;  %2679 = vmatprep.mubr.f32.mxu0 %v4001_v8  ;;  %v1051_v15 = vld [vmem:[#allocation2 + $0x1b0] sm:$0xff] }
 0x1f6   :  { %4051 = vst [vmem:[#allocation17_spill] sm:$0xff] %v3357_v12  ;;  %2680 = vmatmul.mubr.f32.gmra.mrb[22].mxu0 %v4003_v10  ;;  %v4010_v20 = vmax.f32 %v3357_v12, 0.0 }
 0x1f7   :  { %4052 = vst [vmem:[#allocation18_spill] sm:$0xff] %v3359_v14  ;;  %v4012_v17 = vmax.f32 %v3359_v14, 0.0  ;;  %v2631_v19 = vpop.f32.mrb[10].mxu1 }
 0x1f8   :  { %v3367_v21 = vadd.f32 %v2631_v19, %v2385_v42  ;;  %v386_v22 = vpop.f32.mrb[11].mxu1  ;;  %v1052_v19 = vld [vmem:[#allocation2 + $0x1b8] sm:$0xff] }
 0x1f9   :  { %v3369_v25 = vadd.f32 %v2385_v42, %v386_v22  ;;  %2682 = vmatprep.mubr.f32.mxu0 %v4012_v17  ;;  %v2877_v22 = vpack.c.bf16 %v1052_v19, %v1051_v15  ;;  %v3403_v15 = vpop.permute.xlu0 %433 }
 0x1fa   :  { %4053 = vst [vmem:[#allocation19_spill] sm:$0xff] %v3367_v21  ;;  %2683 = vmatmul.mubr.f32.gmra.mrb[24].mxu0 %v4010_v20  ;;  %v4000_v28 = vmax.f32 %v3367_v21, 0.0  ;;  %4060 = vst [vmem:[#allocation26_spill] sm:$0xff] %v3403_v15 }
 0x1fb   :  { %4054 = vst [vmem:[#allocation20_spill] sm:$0xff] %v3369_v25  ;;  %v4008_v27 = vmax.f32 %v3369_v25, 0.0  ;;  %v2634_v4 = vpop.f32.mrb[12].mxu1 }
 0x1fc   :  { %v3377_v30 = vadd.f32 %v2634_v4, %v2385_v42  ;;  %v396_v32 = vpop.f32.mrb[13].mxu1  ;;  %v1053_v4 = vld [vmem:[#allocation2 + $0x1c0] sm:$0xff] }
 0x1fd   :  { %v3379_v33 = vadd.f32 %v2385_v42, %v396_v32  ;;  %2685 = vmatprep.mubr.f32.mxu0 %v4008_v27  ;;  %v1054_v32 = vld [vmem:[#allocation2 + $0x1c8] sm:$0xff] }
 0x1fe   :  { %4055 = vst [vmem:[#allocation21_spill] sm:$0xff] %v3377_v30  ;;  %2686 = vmatmul.mubr.f32.gmra.mrb[26].mxu0 %v4000_v28  ;;  %v3999_v37 = vmax.f32 %v3377_v30, 0.0 }
 0x1ff   :  { %4056 = vst [vmem:[#allocation22_spill] sm:$0xff] %v3379_v33  ;;  %v4002_v34 = vmax.f32 %v3379_v33, 0.0  ;;  %v2637_v35 = vpop.f32.mrb[14].mxu1 }
 0x200   :  { %v3387_v38 = vadd.f32 %v2637_v35, %v2385_v42  ;;  %v406_v39 = vpop.f32.mrb[15].mxu1  ;;  %v2881_v35 = vpack.c.bf16 %v1054_v32, %v1053_v4 }
 0x201   :  { %v3389_v40 = vadd.f32 %v2385_v42, %v406_v39  ;;  %2688 = vmatprep.mubr.f32.mxu0 %v4002_v34  ;;  %v2865_v42 = vpack.c.bf16 %v1046_v48, %v1045_v45  ;;  %v1055_v39 = vld [vmem:[#allocation2 + $0x1d0] sm:$0xff]  ;;  %v1056_v45 = vld [vmem:[#allocation2 + $0x1d8] sm:$0xff]  ;;  %v1057_v48 = vld [vmem:[#allocation2 + $0x1e0] sm:$0xff] }
 0x202   :  { %4057 = vst [vmem:[#allocation23_spill] sm:$0xff] %v3387_v38  ;;  %2689 = vmatmul.mubr.f32.gmra.mrb[28].mxu0 %v3999_v37  ;;  %v3998_v43 = vmax.f32 %v3387_v38, 0.0  ;;  %v2889_v54 = vpack.c.bf16 %v1058_v51, %v1057_v48 }
 0x203   :  { %4058 = vst [vmem:[#allocation24_spill] sm:$0xff] %v3389_v40  ;;  %v3997_v41 = vmax.f32 %v3389_v40, 0.0  ;;  %2866 = vmatprep.subr.bf16.mxu1 %v2865_v42 }
 0x204   :  { %2868 = vmatpush3.bf16.msra.mxu1 %v2865_v42  ;;  %v2885_v42 = vpack.c.bf16 %v1056_v45, %v1055_v39 }
 0x205   :  { %2691 = vmatprep.mubr.f32.mxu0 %v3997_v41  ;;  %2870 = vmatprep.subr.bf16.mxu1 %v2869_v59 }
 0x206   :  { %2692 = vmatmul.mubr.f32.gmra.mrb[30].mxu0 %v3998_v43 }
 0x208   :  { %2872 = vmatpush3.bf16.msra.mxu1 %v2869_v59  ;;  %v1059_v59 = vld [vmem:[#allocation2 + $0x1f0] sm:$0xff] }
 0x209   :  { %2874 = vmatprep.subr.bf16.mxu1 %v2873_v9  ;;  %v2893_v3 = vpack.c.bf16 %v1060_v63, %v1059_v59 }
 0x20c   :  { %2876 = vmatpush3.bf16.msra.mxu1 %v2873_v9  ;;  %v3401_v9 = vpop.permute.xlu1 %443 }
 0x20d   :  { %2878 = vmatprep.subr.bf16.mxu1 %v2877_v22  ;;  %4059 = vst [vmem:[#allocation25_spill] sm:$0xff] %v3401_v9 }
 0x210   :  { %2880 = vmatpush3.bf16.msra.mxu1 %v2877_v22  ;;  %v3405_v19 = vpop.permute.xlu1 %473  ;;  %v3407_v22 = vpop.permute.xlu0 %438 }
 0x211   :  { %2882 = vmatprep.subr.bf16.mxu1 %v2881_v35  ;;  %4061 = vst [vmem:[#allocation27_spill] sm:$0xff] %v3407_v22 }
 0x214   :  { %2884 = vmatpush3.bf16.msra.mxu1 %v2881_v35  ;;  %v3409_v4 = vpop.permute.xlu1 %448  ;;  %v3411_v32 = vpop.permute.xlu0 %478 }
 0x215   :  { %2886 = vmatprep.subr.bf16.mxu1 %v2885_v42  ;;  %4062 = vst [vmem:[#allocation28_spill] sm:$0xff] %v3409_v4 }
 0x218   :  { %2888 = vmatpush3.bf16.msra.mxu1 %v2885_v42  ;;  %v3413_v35 = vpop.permute.xlu1 %453  ;;  %v3415_v39 = vpop.permute.xlu0 %483 }
 0x219   :  { %2890 = vmatprep.subr.bf16.mxu1 %v2889_v54  ;;  %4063 = vst [vmem:[#allocation29_spill] sm:$0xff] %v3413_v35 }
 0x21c   :  { %2892 = vmatpush3.bf16.msra.mxu1 %v2889_v54  ;;  %v3417_v45 = vpop.permute.xlu1 %458  ;;  %v3419_v48 = vpop.permute.xlu0 %488 }
 0x21d   :  { %2894 = vmatprep.subr.bf16.mxu1 %v2893_v3  ;;  %4064 = vst [vmem:[#allocation30_spill] sm:$0xff] %v3417_v45  ;;  %4065 = vst [vmem:[#allocation31_spill] sm:$0xff] %v3419_v48 }
 0x220   :  { %2896 = vmatpush3.bf16.msra.mxu1 %v2893_v3  ;;  %v3421_v42 = vpop.permute.xlu1 %463  ;;  %v3423_v51 = vpop.permute.xlu0 %493  ;;  %v3434_v3 = vld [vmem:[%s3995_s3 + $0x2] ss:$0 sm:$0xff] }
 0x221   :  { %4066 = vst [vmem:[#allocation32_spill] sm:$0xff] %v3421_v42  ;;  %4067 = vst [vmem:[#allocation33_spill] sm:$0xff] %v3423_v51 }
 0x224   :  { %v3425_v54 = vpop.permute.xlu1 %468  ;;  %v3427_v59 = vpop.permute.xlu0 %498 }
 0x225   :  { %4068 = vst [vmem:[#allocation34_spill] sm:$0xff] %v3427_v59 }
 0x228   :  { %v3429_v63 = vpop.permute.xlu1 %508  ;;  %v3436_v41 = vpop.permute.xlu0 %503 }
 0x229   :  { %4069 = vst [vmem:[#allocation35_spill] sm:$0xff] %v3429_v63  ;;  %4070 = vst [vmem:[#allocation36_spill] sm:$0xff] %v3436_v41 }
 0x22c   :  { %v957_v37 = vpop.permute.xlu1 %956  ;;  %v952_v10 = vpop.permute.xlu0 %951 }
 0x230   :  { %v3444_v17 = vpop.permute.xlu1 %991 }
 0x2bd   :  { %v2672_v43 = vpop.f32.mrb[16].mxu0 }
 0x2be   :  { %v619_v28 = vadd.f32 %v2672_v43, %v3434_v3  ;;  %v613_v8 = vpop.f32.mrb[17].mxu0 }
 0x2bf   :  { %v614_v34 = vadd.f32 %v3434_v3, %v613_v8 }
 0x2c0   :  { %v822_v53 = vmul.f32 %v619_v28, %v3407_v22  ;;  %v3448_v28 = vpop.permute.xlu0 %961 }
 0x2c1   :  { %v821_v1 = vmul.f32 %v614_v34, %v3403_v15  ;;  %v2675_v55 = vpop.f32.mrb[18].mxu0 }
 0x2c2   :  { %v843_v49 = vrot.slane %v822_v53, 4  ;;  %v629_v27 = vadd.f32 %v2675_v55, %v3434_v3  ;;  %v623_v61 = vpop.f32.mrb[19].mxu0 }
 0x2c3   :  { %v837_v20 = vrot.slane %v821_v1, 4  ;;  %v624_v47 = vadd.f32 %v3434_v3, %v623_v61 }
 0x2c4   :  { %v844_v40 = vadd.f32 %v843_v49, %v822_v53  ;;  %v824_v43 = vmul.f32 %v629_v27, %v3409_v4  ;;  %v967_v27 = vpop.permute.xlu1 %966 }
 0x2c5   :  { %v838_v38 = vadd.f32 %v837_v20, %v821_v1  ;;  %v823_v8 = vmul.f32 %v624_v47, %v3401_v9  ;;  %v2678_v30 = vpop.f32.mrb[20].mxu0 }
 0x2c6   :  { %v845_v34 = vrot.slane %v844_v40, 2  ;;  %v855_v21 = vrot.slane %v824_v43, 4  ;;  %v639_v6 = vadd.f32 %v2678_v30, %v3434_v3  ;;  %v633_v55 = vpop.f32.mrb[21].mxu0 }
 0x2c7   :  { %v839_v33 = vrot.slane %v838_v38, 2  ;;  %v849_v2 = vrot.slane %v823_v8, 4  ;;  %v634_v61 = vadd.f32 %v3434_v3, %v633_v55 }
 0x2c8   :  { %v846_v52 = vadd.f32 %v845_v34, %v844_v40  ;;  %v856_v57 = vadd.f32 %v855_v21, %v824_v43  ;;  %v826_v49 = vmul.f32 %v639_v6, %v3417_v45  ;;  %v3456_v40 = vpop.permute.xlu0 %996 }
 0x2c9   :  { %v840_v53 = vadd.f32 %v839_v33, %v838_v38  ;;  %v850_v1 = vadd.f32 %v849_v2, %v823_v8  ;;  %v825_v47 = vmul.f32 %v634_v61, %v3413_v35  ;;  %v2681_v20 = vpop.f32.mrb[22].mxu0 }
 0x2ca   :  { %v847_v9 = vrot.slane %v846_v52, 1  ;;  %v857_v4 = vrot.slane %v856_v57, 2  ;;  %v867_v50 = vrot.slane %v826_v49, 4  ;;  %v649_v30 = vadd.f32 %v2681_v20, %v3434_v3  ;;  %v643_v22 = vpop.f32.mrb[23].mxu0 }
 0x2cb   :  { %v841_v44 = vrot.slane %v840_v53, 1  ;;  %v851_v25 = vrot.slane %v850_v1, 2  ;;  %v861_v55 = vrot.slane %v825_v47, 4  ;;  %v644_v21 = vadd.f32 %v3434_v3, %v643_v22 }
 0x2cc   :  { %v848_v6 = vadd.f32 %v847_v9, %v846_v52  ;;  %v858_v33 = vadd.f32 %v857_v4, %v856_v57  ;;  %v868_v2 = vadd.f32 %v867_v50, %v826_v49  ;;  %v828_v38 = vmul.f32 %v649_v30, %v3425_v54  ;;  %v3460_v52 = vpop.permute.xlu1 %971 }
 0x2cd   :  { %v842_v43 = vadd.f32 %v841_v44, %v840_v53  ;;  %v852_v8 = vadd.f32 %v851_v25, %v850_v1  ;;  %v862_v34 = vadd.f32 %v861_v55, %v825_v47  ;;  %v827_v61 = vmul.f32 %v644_v21, %v3421_v42  ;;  %v2684_v45 = vpop.f32.mrb[24].mxu0  ;;  %v3466_v53 = vpop.permute.xlu0 %1001 }
 0x2ce   :  { %v1030_v20 = vmul.f32 %v957_v37, %v848_v6  ;;  %v859_v35 = vrot.slane %v858_v33, 1  ;;  %v869_v60 = vrot.slane %v868_v2, 2  ;;  %v879_v12 = vrot.slane %v828_v38, 4  ;;  %v653_v15 = vpop.f32.mrb[25].mxu0 }
 0x2cf   :  { %v1029_v46 = vmul.f32 %v952_v10, %v842_v43  ;;  %v853_v22 = vrot.slane %v852_v8, 1  ;;  %v863_v14 = vrot.slane %v862_v34, 2  ;;  %v873_v36 = vrot.slane %v827_v61, 4 }
 0x2d0   :  { %v860_v50 = vadd.f32 %v859_v35, %v858_v33  ;;  %v870_v57 = vadd.f32 %v869_v60, %v868_v2  ;;  %v880_v9 = vadd.f32 %v879_v12, %v828_v38  ;;  %v659_v44 = vadd.f32 %v2684_v45, %v3434_v3  ;;  %v977_v43 = vpop.permute.xlu1 %976 }
 0x2d1   :  { %v3464_v25 = vsel %vm1077_vm1, %v1030_v20, %v1029_v46  ;;  %v864_v4 = vadd.f32 %v863_v14, %v862_v34  ;;  %v874_v37 = vadd.f32 %v873_v36, %v827_v61  ;;  %v2687_v49 = vpop.f32.mrb[26].mxu0  ;;  %v854_v1 = vadd.f32 %v853_v22, %v852_v8 }
 0x2d2   :  { %v871_v10 = vrot.slane %v870_v57, 1  ;;  %v881_v47 = vrot.slane %v880_v9, 2  ;;  %v830_v30 = vmul.f32 %v659_v44, %v3411_v32  ;;  %v663_v55 = vpop.f32.mrb[27].mxu0  ;;  %v654_v60 = vadd.f32 %v3434_v3, %v653_v15 }
 0x2d3   :  { %v865_v21 = vrot.slane %v864_v4, 1  ;;  %v875_v35 = vrot.slane %v874_v37, 2  ;;  %v3470_v12 = vmul.f32 %v967_v27, %v860_v50  ;;  %v669_v14 = vadd.f32 %v2687_v49, %v3434_v3 }
 0x2d4   :  { %v872_v45 = vadd.f32 %v871_v10, %v870_v57  ;;  %v891_v46 = vrot.slane %v830_v30, 4  ;;  %v3473_v36 = vadd.f32 %v881_v47, %v880_v9  ;;  %v829_v33 = vmul.f32 %v654_v60, %v3405_v19  ;;  %v3484_v9 = vpop.permute.xlu0 %1006 }
 0x2d5   :  { %v876_v6 = vadd.f32 %v875_v35, %v874_v37  ;;  %v664_v2 = vadd.f32 %v3434_v3, %v663_v55  ;;  %v2690_v38 = vpop.f32.mrb[28].mxu0  ;;  %v3478_v8 = vmul.f32 %v3448_v28, %v854_v1  ;;  %v866_v34 = vadd.f32 %v865_v21, %v864_v4 }
 0x2d6   :  { %v892_v15 = vadd.f32 %v891_v46, %v830_v30  ;;  %v832_v27 = vmul.f32 %v669_v14, %v3419_v48  ;;  %v673_v61 = vpop.f32.mrb[29].mxu0  ;;  %v3481_v20 = vmul.f32 %v977_v43, %v872_v45  ;;  %v885_v50 = vrot.slane %v829_v33, 4 }
 0x2d7   :  { %v877_v22 = vrot.slane %v876_v6, 1  ;;  %v831_v57 = vmul.f32 %v664_v2, %v3415_v39  ;;  %v679_v49 = vadd.f32 %v2690_v38, %v3434_v3  ;;  %v674_v28 = vadd.f32 %v3434_v3, %v673_v61 }
 0x2d8   :  { %v893_v44 = vrot.slane %v892_v15, 2  ;;  %v903_v37 = vrot.slane %v832_v27, 4  ;;  %v883_v4 = vrot.slane %v3473_v36, 1  ;;  %v886_v10 = vadd.f32 %v885_v50, %v829_v33 }
 0x2d9   :  { %v878_v1 = vadd.f32 %v877_v22, %v876_v6  ;;  %v897_v47 = vrot.slane %v831_v57, 4  ;;  %v2693_v30 = vpop.f32.mrb[30].mxu0  ;;  %v834_v35 = vmul.f32 %v679_v49, %v3427_v59  ;;  %v833_v60 = vmul.f32 %v674_v28, %v3423_v51 }
 0x2da   :  { %v894_v55 = vadd.f32 %v893_v44, %v892_v15  ;;  %v904_v21 = vadd.f32 %v903_v37, %v832_v27  ;;  %v683_v45 = vpop.f32.mrb[31].mxu0  ;;  %v887_v46 = vrot.slane %v886_v10, 2  ;;  %v689_v2 = vadd.f32 %v2693_v30, %v3434_v3  ;;  %v1012_v44 = vpop.permute.xlu0 %1011 }
 0x2db   :  { %v898_v14 = vadd.f32 %v897_v47, %v831_v57  ;;  %v684_v38 = vadd.f32 %v3434_v3, %v683_v45  ;;  %v915_v6 = vrot.slane %v834_v35, 4  ;;  %v909_v33 = vrot.slane %v833_v60, 4  ;;  %v982_v47 = vpop.permute.xlu1 %981 }
 0x2dc   :  { %v895_v43 = vrot.slane %v894_v55, 1  ;;  %v905_v61 = vrot.slane %v904_v21, 2  ;;  %v888_v22 = vadd.f32 %v887_v46, %v886_v10  ;;  %v836_v27 = vmul.f32 %v689_v2, %v3429_v63 }
 0x2dd   :  { %v899_v15 = vrot.slane %v898_v14, 2  ;;  %v835_v50 = vmul.f32 %v684_v38, %v3436_v41  ;;  %v916_v49 = vadd.f32 %v915_v6, %v834_v35  ;;  %v910_v28 = vadd.f32 %v909_v33, %v833_v60 }
 0x2de   :  { %v896_v37 = vadd.f32 %v895_v43, %v894_v55  ;;  %v906_v57 = vadd.f32 %v905_v61, %v904_v21  ;;  %v889_v3 = vrot.slane %v888_v22, 1  ;;  %v927_v45 = vrot.slane %v836_v27, 4 }
 0x2df   :  { %v900_v30 = vadd.f32 %v899_v15, %v898_v14  ;;  %v921_v59 = vrot.slane %v835_v50, 4  ;;  %v917_v48 = vrot.slane %v916_v49, 2  ;;  %v911_v2 = vrot.slane %v910_v28, 2  ;;  %v1017_v15 = vpop.permute.xlu0 %1016 }
 0x2e0   :  { %v1038_v10 = vmul.f32 %v3456_v40, %v896_v37  ;;  %v907_v46 = vrot.slane %v906_v57, 1  ;;  %v890_v38 = vadd.f32 %v889_v3, %v888_v22  ;;  %v928_v63 = vadd.f32 %v927_v45, %v836_v27  ;;  %v987_v22 = vpop.permute.xlu1 %986 }
 0x2e1   :  { %v901_v41 = vrot.slane %v900_v30, 1  ;;  %v922_v55 = vadd.f32 %v921_v59, %v835_v50  ;;  %v1033_v21 = vmul.f32 %v3460_v52, %v866_v34  ;;  %v918_v60 = vadd.f32 %v917_v48, %v916_v49 }
 0x2e2   :  { %v908_v35 = vadd.f32 %v907_v46, %v906_v57  ;;  %v912_v43 = vadd.f32 %v911_v2, %v910_v28  ;;  %v1037_v14 = vmul.f32 %v3444_v17, %v890_v38  ;;  %v929_v6 = vrot.slane %v928_v63, 2 }
 0x2e3   :  { %v902_v61 = vadd.f32 %v901_v41, %v900_v30  ;;  %v923_v33 = vrot.slane %v922_v55, 2  ;;  %v919_v40 = vrot.slane %v918_v60, 1  ;;  %v884_v42 = vadd.f32 %v883_v4, %v3473_v36 }
 0x2e4   :  { %v913_v37 = vrot.slane %v912_v43, 1  ;;  %v1035_v51 = vmul.f32 %v982_v47, %v878_v1  ;;  %v1091_v27 = vsel %vm1077_vm1, %v1038_v10, %v1037_v14  ;;  %v930_v52 = vadd.f32 %v929_v6, %v928_v63  ;;  %v1027_v10 = vpop.permute.xlu1 %1026 }
 0x2e5   :  { %v1039_v59 = vmul.f32 %v3466_v53, %v902_v61  ;;  %v924_v34 = vadd.f32 %v923_v33, %v922_v55  ;;  %v1040_v48 = vmul.f32 %v3484_v9, %v908_v35  ;;  %v920_v50 = vadd.f32 %v919_v40, %v918_v60 }
 0x2e6   :  { %v914_v17 = vadd.f32 %v913_v37, %v912_v43  ;;  %v1080_v41 = vsel %vm1079_vm2, %v3478_v8, %v3464_v25  ;;  %v931_v49 = vrot.slane %v930_v52, 1  ;;  %v1036_v28 = vmul.f32 %v987_v22, %v884_v42  ;;  %v1022_v25 = vpop.permute.xlu0 %1021 }
 0x2e7   :  { %v1092_v57 = vsel %vm1079_vm2, %v1039_v59, %v1091_v27  ;;  %v925_v36 = vrot.slane %v924_v34, 1  ;;  %v1082_v4 = vsel %vm1081_vm3, %v3470_v12, %v1080_v41  ;;  %v1042_v9 = vmul.f32 %v1017_v15, %v920_v50 }
 0x2e8   :  { %v1041_v1 = vmul.f32 %v1012_v44, %v914_v17  ;;  %v1084_v63 = vsel %vm1083_vm4, %v1033_v21, %v1082_v4  ;;  %v1093_v53 = vsel %vm1081_vm3, %v1040_v48, %v1092_v57  ;;  %v932_v47 = vadd.f32 %v931_v49, %v930_v52 }
 0x2e9   :  { %v926_v3 = vadd.f32 %v925_v36, %v924_v34  ;;  %v1086_v30 = vsel %vm1085_vm5, %v3481_v20, %v1084_v63  ;;  %v3093_v55 = vmov 1966171168   ;;  %v1181_v21 = vlaneseq }
 0x2ea   :  { %v1088_v8 = vsel %vm1087_vm6, %v1035_v51, %v1086_v30  ;;  %v1094_v45 = vsel %vm1083_vm4, %v1041_v1, %v1093_v53  ;;  %v1044_v44 = vmul.f32 %v1027_v10, %v932_v47  ;;  %v1179_v20 = vunpack.c.l.s4 %v3093_v55 }
 0x2eb   :  { %v1043_v46 = vmul.f32 %v1022_v25, %v926_v3  ;;  %v1090_v12 = vsel %vm1089_vm7, %v1036_v28, %v1088_v8  ;;  %v1095_v42 = vsel %vm1085_vm5, %v1042_v9, %v1094_v45  ;;  %v1182_v51 = vshrl.u32 %v1181_v21, 7 }
 0x2ec   :  { %2726 = vmatprep.mubr.f32.mxu1 %v1090_v12  ;;  %v1180_v35 = vunpack.c.0.s8 %v1179_v20 }
 0x2ed   :  { %v1096_v2 = vsel %vm1087_vm6, %v1043_v46, %v1095_v42  ;;  %v1277_v61 = vsub.s32 0, %v1182_v51 }
 0x2ee   :  { %v1097_v38 = vsel %vm1089_vm7, %v1044_v44, %v1096_v2  ;;  %v1183_v60 = vsub.s32 %v1180_v35, %v1182_v51 }
 0x2ef   :  { %2727 = vmatmul.mubr.f32.vlgmr.msra.gmra.mrb[16].mxu1 %v1097_v38 }
 0x3c2   :  { %v2728_v43 = vpop.f32.mrb[16].mxu1 }
 0x3c3   :  { %v1233_v14 = vrot.slane %v2728_v43, %v1183_v60  ;;  %v1166_v6 = vpop.f32.mrb[17].mxu1  ;;  %v1226_v34 = vcombine.high %v2728_v43, %v2728_v43 }
 0x3c4   :  { %v1177_v33 = vcombine.high %v1166_v6, %v1166_v6  ;;  %v1184_v15 = vrot.slane %v1166_v6, %v1183_v60 }
 0x3c5   :  { %v1241_v40 = vcombine.high %v1233_v14, %v1233_v14  ;;  %v1249_v37 = vrot.slane %v1233_v14, %v1183_v60  ;;  %v1240_v49 = vrot.slane %v1226_v34, %v1183_v60 }
 0x3c6   :  { %v1192_v22 = vcombine.high %v1184_v15, %v1184_v15  ;;  %v1200_v27 = vrot.slane %v1184_v15, %v1183_v60  ;;  %v1191_v59 = vrot.slane %v1177_v33, %v1183_v60 }
 0x3c7   :  { %v1310_v52 = vrot.slane %v1249_v37, %v1277_v61  ;;  %v1263_v17 = vrot.slane %v1241_v40, %v1183_v60  ;;  %v1271_v4 = vcombine.high %v1249_v37, %v1249_v37  ;;  %v1256_v9 = vrot.slane %v1240_v49, %v1183_v60 }
 0x3c8   :  { %v1278_v48 = vrot.slane %v1200_v27, %v1277_v61  ;;  %v1214_v50 = vrot.slane %v1192_v22, %v1183_v60  ;;  %v1207_v57 = vrot.slane %v1191_v59, %v1183_v60  ;;  %v1193_v63 = vcombine.high %v1191_v59, %v1191_v59 }
 0x3c9   :  { %1355 = vrot.lane.b32.xlu1 %v1310_v52, %s3091_s26  ;;  %v1314_v36 = vrot.slane %v1263_v17, %v1277_v61  ;;  %v1318_v53 = vrot.slane %v1271_v4, %v1277_v61  ;;  %v1326_v30 = vrot.slane %v1256_v9, %v1277_v61  ;;  %v1222_v25 = vcombine.high %v1200_v27, %v1200_v27 }
 0x3ca   :  { %1339 = vrot.lane.b32.xlu0 %v1278_v48, %s3091_s26  ;;  %v1282_v41 = vrot.slane %v1214_v50, %v1277_v61  ;;  %v1294_v1 = vrot.slane %v1207_v57, %v1277_v61  ;;  %v1224_v28 = vcombine.high %v1214_v50, %v1214_v50  ;;  %v1221_v3 = vrot.slane %v1193_v63, %v1183_v60 }
 0x3cb   :  { %v1223_v45 = vcombine.high %v1207_v57, %v1207_v57  ;;  %v1242_v10 = vcombine.high %v1240_v49, %v1240_v49  ;;  %v1286_v46 = vrot.slane %v1222_v25, %v1277_v61  ;;  %v1273_v12 = vcombine.high %v1263_v17, %v1263_v17 }
 0x3cc   :  { %v1290_v47 = vrot.slane %v1224_v28, %v1277_v61  ;;  %v1298_v8 = vrot.slane %v1221_v3, %v1277_v61  ;;  %v1225_v44 = vcombine.high %v1221_v3, %v1221_v3  ;;  %v1272_v35 = vcombine.high %v1256_v9, %v1256_v9 }
 0x3cd   :  { %1341 = vrot.lane.b32.xlu1 %v1282_v41, %s3091_s26  ;;  %v1302_v42 = vrot.slane %v1223_v45, %v1277_v61  ;;  %v1270_v2 = vrot.slane %v1242_v10, %v1183_v60  ;;  %v1322_v38 = vrot.slane %v1273_v12, %v1277_v61  ;;  %v3094_v60 = vmov 9  }
 0x3ce   :  { %1357 = vrot.lane.b32.xlu0 %v1314_v36, %s3091_s26  ;;  %v1306_v55 = vrot.slane %v1225_v44, %v1277_v61  ;;  %v1334_v43 = vrot.slane %v1272_v35, %v1277_v61  ;;  %2941 = vset.pattern.permute.xlu1 %v3094_v60 }
 0x3cf   :  { %v1274_v20 = vcombine.high %v1270_v2, %v1270_v2  ;;  %v1330_v21 = vrot.slane %v1270_v2, %v1277_v61  ;;  %2940 = vset.pattern.permute.xlu0 %v3094_v60 }
 0x3d1   :  { %1347 = vrot.lane.b32.xlu1 %v1294_v1, %s3091_s26  ;;  %v1338_v51 = vrot.slane %v1274_v20, %v1277_v61 }
 0x3d2   :  { %1359 = vrot.lane.b32.xlu0 %v1318_v53, %s3091_s26 }
 0x3d5   :  { %1345 = vrot.lane.b32.xlu1 %v1290_v47, %s3091_s26 }
 0x3d6   :  { %1363 = vrot.lane.b32.xlu0 %v1326_v30, %s3091_s26 }
 0x3d9   :  { %1349 = vrot.lane.b32.xlu1 %v1298_v8, %s3091_s26 }
 0x3da   :  { %1343 = vrot.lane.b32.xlu0 %v1286_v46, %s3091_s26 }
 0x3dd   :  { %1351 = vrot.lane.b32.xlu1 %v1302_v42, %s3091_s26 }
 0x3de   :  { %1361 = vrot.lane.b32.xlu0 %v1322_v38, %s3091_s26 }
 0x3e1   :  { %1353 = vrot.lane.b32.xlu1 %v1306_v55, %s3091_s26 }
 0x3e2   :  { %1365 = vrot.lane.b32.xlu0 %v1330_v21, %s3091_s26 }
 0x3e5   :  { %1369 = vrot.lane.b32.xlu1 %v1338_v51, %s3091_s26 }
 0x3e6   :  { %1367 = vrot.lane.b32.xlu0 %v1334_v43, %s3091_s26 }
 0x43b   :  { %v1356_v14 = vpop.permute.xlu1 %1355 }
 0x43c   :  { %v1395_v6 = vadd.f32 %v1356_v14, %v3296_v16  ;;  %v1340_v33 = vpop.permute.xlu0 %1339 }
 0x43d   :  { %v1387_v15 = vadd.f32 %v1340_v33, %v3272_v58 }
 0x43e   :  { %v1460_v40 = vsel %vm1403_vm8, %v1395_v6, -inf }
 0x43f   :  { %v1461_v37 = vrot.slane %v1460_v40, 4  ;;  %v1404_v61 = vsel %vm1403_vm8, %v1387_v15, -inf  ;;  %v1342_v22 = vpop.permute.xlu1 %1341 }
 0x440   :  { %v1405_v27 = vrot.slane %v1404_v61, 4  ;;  %v3541_v59 = vadd.f32 %v1342_v22, %v3270_v56  ;;  %v1358_v52 = vpop.permute.xlu0 %1357 }
 0x441   :  { %v1462_v34 = vmax.f32 %v1460_v40, %v1461_v37  ;;  %v3544_v48 = vadd.f32 %v1358_v52, %v3294_v18 }
 0x442   :  { %v1406_v50 = vmax.f32 %v1404_v61, %v1405_v27  ;;  %v1411_v16 = vsel %vm1403_vm8, %v3541_v59, -inf }
 0x443   :  { %v1463_v58 = vrot.slane %v1462_v34, 2  ;;  %v1412_v17 = vrot.slane %v1411_v16, 4  ;;  %v1467_v41 = vsel %vm1403_vm8, %v3544_v48, -inf  ;;  %v1348_v57 = vpop.permute.xlu1 %1347 }
 0x444   :  { %v1407_v49 = vrot.slane %v1406_v50, 2  ;;  %v1468_v36 = vrot.slane %v1467_v41, 4  ;;  %v3551_v56 = vadd.f32 %v1348_v57, %v3284_v7  ;;  %v1360_v4 = vpop.permute.xlu0 %1359 }
 0x445   :  { %v1464_v1 = vmax.f32 %v1462_v34, %v1463_v58  ;;  %v1413_v28 = vmax.f32 %v1411_v16, %v1412_v17  ;;  %v3554_v18 = vadd.f32 %v1360_v4, %v3302_v26 }
 0x446   :  { %v1408_v63 = vmax.f32 %v1406_v50, %v1407_v49  ;;  %v1469_v53 = vmax.f32 %v1467_v41, %v1468_v36  ;;  %v1432_v9 = vsel %vm1403_vm8, %v3551_v56, -inf }
 0x447   :  { %v1465_v47 = vrot.slane %v1464_v1, 1  ;;  %v1414_v3 = vrot.slane %v1413_v28, 2  ;;  %v1433_v30 = vrot.slane %v1432_v9, 4  ;;  %v1474_v25 = vsel %vm1403_vm8, %v3554_v18, -inf  ;;  %v1346_v8 = vpop.permute.xlu1 %1345 }
 0x448   :  { %v1409_v7 = vrot.slane %v1408_v63, 1  ;;  %v1470_v45 = vrot.slane %v1469_v53, 2  ;;  %v1475_v10 = vrot.slane %v1474_v25, 4  ;;  %v3561_v46 = vadd.f32 %v1346_v8, %v3276_v62  ;;  %v1364_v26 = vpop.permute.xlu0 %1363 }
 0x449   :  { %v1466_v12 = vmax.f32 %v1464_v1, %v1465_v47  ;;  %v1415_v42 = vmax.f32 %v1413_v28, %v1414_v3  ;;  %v1434_v44 = vmax.f32 %v1432_v9, %v1433_v30  ;;  %v3564_v2 = vadd.f32 %v1364_v26, %v3308_v31 }
 0x44a   :  { %v1410_v38 = vmax.f32 %v1408_v63, %v1409_v7  ;;  %v1471_v55 = vmax.f32 %v1469_v53, %v1470_v45  ;;  %v1476_v20 = vmax.f32 %v1474_v25, %v1475_v10  ;;  %v1425_v21 = vsel %vm1403_vm8, %v3561_v46, -inf }
 0x44b   :  { %v1524_v35 = vsub.f32 %v1395_v6, %v1466_v12  ;;  %v1416_v51 = vrot.slane %v1415_v42, 1  ;;  %v1435_v43 = vrot.slane %v1434_v44, 2  ;;  %v1426_v14 = vrot.slane %v1425_v21, 4  ;;  %v1350_v33 = vpop.permute.xlu1 %1349 }
 0x44c   :  { %v1516_v62 = vsub.f32 %v1387_v15, %v1410_v38  ;;  %v1472_v40 = vrot.slane %v1471_v55, 1  ;;  %v1477_v37 = vrot.slane %v1476_v20, 2  ;;  %v1488_v61 = vsel %vm1403_vm8, %v3564_v2, -inf  ;;  %v1344_v17 = vpop.permute.xlu0 %1343 }
 0x44d   :  { %v1548_v22 = vmul.f32 1.442695, %v1524_v35  ;;  %v1417_v31 = vmax.f32 %v1415_v42, %v1416_v51  ;;  %v1436_v27 = vmax.f32 %v1434_v44, %v1435_v43  ;;  %v1427_v52 = vmax.f32 %v1425_v21, %v1426_v14 }
 0x44e   :  { %v1532_v34 = vmul.f32 1.442695, %v1516_v62  ;;  %v1473_v50 = vmax.f32 %v1471_v55, %v1472_v40  ;;  %v1478_v16 = vmax.f32 %v1476_v20, %v1477_v37  ;;  %v1489_v58 = vrot.slane %v1488_v61, 4 }
 0x44f   :  { %2977 = vpow2.f32 %v1548_v22  ;;  %v1517_v6 = vsub.f32 %v3541_v59, %v1417_v31  ;;  %v1437_v41 = vrot.slane %v1436_v27, 1  ;;  %v1428_v57 = vrot.slane %v1427_v52, 2  ;;  %v1352_v4 = vpop.permute.xlu1 %1351 }
 0x450   :  { %2979 = vpow2.f32 %v1532_v34  ;;  %v1525_v15 = vsub.f32 %v3544_v48, %v1473_v50  ;;  %v1479_v49 = vrot.slane %v1478_v16, 1  ;;  %v1490_v36 = vmax.f32 %v1488_v61, %v1489_v58 }
 0x451   :  { %v1534_v1 = vmul.f32 1.442695, %v1517_v6  ;;  %v1438_v28 = vmax.f32 %v1436_v27, %v1437_v41  ;;  %v1429_v63 = vmax.f32 %v1427_v52, %v1428_v57  ;;  %v3573_v53 = vadd.f32 %v1350_v33, %v3282_v5  ;;  %v1362_v5 = vpop.permute.xlu0 %1361 }
 0x452   :  { %v1550_v9 = vmul.f32 1.442695, %v1525_v15  ;;  %v1480_v47 = vmax.f32 %v1478_v16, %v1479_v49  ;;  %v1491_v3 = vrot.slane %v1490_v36, 2  ;;  %v3576_v30 = vadd.f32 %v1344_v17, %v3278_v0 }
 0x453   :  { %2981 = vpow2.f32 %v1534_v1  ;;  %v1520_v59 = vsub.f32 %v3551_v56, %v1438_v28  ;;  %v1430_v25 = vrot.slane %v1429_v63, 1  ;;  %v1439_v48 = vsel %vm1403_vm8, %v3573_v53, -inf  ;;  %v1354_v55 = vpop.permute.xlu1 %1353 }
 0x454   :  { %2983 = vpow2.f32 %v1550_v9  ;;  %v1526_v8 = vsub.f32 %v3554_v18, %v1480_v47  ;;  %v1492_v7 = vmax.f32 %v1490_v36, %v1491_v3  ;;  %v1440_v45 = vrot.slane %v1439_v48, 4 }
 0x455   :  { %v1540_v10 = vmul.f32 1.442695, %v1520_v59  ;;  %v1431_v26 = vmax.f32 %v1429_v63, %v1430_v25  ;;  %v1418_v12 = vsel %vm1403_vm8, %v3576_v30, -inf  ;;  %v3585_v0 = vadd.f32 %v1352_v4, %v3290_v13 }
 0x456   :  { %v1552_v42 = vmul.f32 1.442695, %v1526_v8  ;;  %v1493_v56 = vrot.slane %v1492_v7, 1  ;;  %v1441_v44 = vmax.f32 %v1439_v48, %v1440_v45  ;;  %v1419_v38 = vrot.slane %v1418_v12, 4 }
 0x457   :  { %2985 = vpow2.f32 %v1540_v10  ;;  %v1519_v20 = vsub.f32 %v3561_v46, %v1431_v26  ;;  %v1446_v18 = vsel %vm1403_vm8, %v3585_v0, -inf  ;;  %v3591_v21 = vadd.f32 %v1362_v5, %v3300_v24 }
 0x458   :  { %2987 = vpow2.f32 %v1552_v42  ;;  %v1494_v35 = vmax.f32 %v1492_v7, %v1493_v56  ;;  %v1442_v51 = vrot.slane %v1441_v44, 2  ;;  %v1420_v43 = vmax.f32 %v1418_v12, %v1419_v38  ;;  %v1366_v56 = vpop.permute.xlu0 %1365 }
 0x459   :  { %v3593_v13 = vpop.eup %2977  ;;  %v1538_v14 = vmul.f32 1.442695, %v1519_v20  ;;  %v1447_v33 = vrot.slane %v1446_v18, 4  ;;  %v1481_v62 = vsel %vm1403_vm8, %v3591_v21, -inf  ;;  %v3598_v40 = vadd.f32 %v1354_v55, %v3288_v11 }
 0x45a   :  { %v3600_v46 = vpop.eup %2979  ;;  %v1620_v24 = vsel %vm1403_vm8, %v3593_v13, 0.0  ;;  %v1528_v37 = vsub.f32 %v3564_v2, %v1494_v35  ;;  %v1443_v61 = vmax.f32 %v1441_v44, %v1442_v51  ;;  %v1421_v22 = vrot.slane %v1420_v43, 2 }
 0x45b   :  { %v1621_v31 = vrot.slane %v1620_v24, 4  ;;  %v1564_v27 = vsel %vm1403_vm8, %v3600_v46, 0.0  ;;  %2989 = vpow2.f32 %v1538_v14  ;;  %v1448_v52 = vmax.f32 %v1446_v18, %v1447_v33 }
 0x45c   :  { %v1565_v34 = vrot.slane %v1564_v27, 4  ;;  %v1556_v50 = vmul.f32 1.442695, %v1528_v37  ;;  %v1444_v16 = vrot.slane %v1443_v61, 1  ;;  %v1422_v11 = vmax.f32 %v1420_v43, %v1421_v22 }
 0x45d   :  { %v3607_v58 = vpop.eup %2981  ;;  %v3609_v17 = vadd.f32 %v1621_v31, %v1620_v24  ;;  %v1449_v6 = vrot.slane %v1448_v52, 2  ;;  %v1482_v41 = vrot.slane %v1481_v62, 4  ;;  %v1453_v2 = vsel %vm1403_vm8, %v3598_v40, -inf }
 0x45e   :  { %v3613_v57 = vpop.eup %2983  ;;  %v3615_v15 = vadd.f32 %v1565_v34, %v1564_v27  ;;  %v1571_v49 = vsel %vm1403_vm8, %v3607_v58, 0.0  ;;  %2991 = vpow2.f32 %v1556_v50  ;;  %v1445_v36 = vmax.f32 %v1443_v61, %v1444_v16 }
 0x45f   :  { %v1623_v4 = vrot.slane %v3609_v17, 2  ;;  %v1572_v1 = vrot.slane %v1571_v49, 4  ;;  %v1627_v28 = vsel %vm1403_vm8, %v3613_v57, 0.0  ;;  %v1423_v63 = vrot.slane %v1422_v11, 1 }
 0x460   :  { %v1567_v9 = vrot.slane %v3615_v15, 2  ;;  %v1628_v47 = vrot.slane %v1627_v28, 4  ;;  %v1521_v3 = vsub.f32 %v3573_v53, %v1445_v36  ;;  %v1450_v59 = vmax.f32 %v1448_v52, %v1449_v6  ;;  %v1370_v52 = vpop.permute.xlu1 %1369 }
 0x461   :  { %v3624_v25 = vpop.eup %2985  ;;  %v3626_v48 = vadd.f32 %v1572_v1, %v1571_v49  ;;  %v1424_v8 = vmax.f32 %v1422_v11, %v1423_v63  ;;  %v1483_v7 = vmax.f32 %v1481_v62, %v1482_v41  ;;  %v1454_v45 = vrot.slane %v1453_v2, 4  ;;  %v1368_v41 = vpop.permute.xlu0 %1367 }
 0x462   :  { %v3628_v5 = vpop.eup %2987  ;;  %v3630_v10 = vadd.f32 %v1628_v47, %v1627_v28  ;;  %v1592_v26 = vsel %vm1403_vm8, %v3624_v25, 0.0  ;;  %v1542_v12 = vmul.f32 1.442695, %v1521_v3  ;;  %v1451_v42 = vrot.slane %v1450_v59, 1 }
 0x463   :  { %v1574_v53 = vrot.slane %v3626_v48, 2  ;;  %v1593_v44 = vrot.slane %v1592_v26, 4  ;;  %v1634_v38 = vsel %vm1403_vm8, %v3628_v5, 0.0  ;;  %v1518_v55 = vsub.f32 %v3576_v30, %v1424_v8 }
 0x464   :  { %v1630_v20 = vrot.slane %v3630_v10, 2  ;;  %v1635_v18 = vrot.slane %v1634_v38, 4  ;;  %2993 = vpow2.f32 %v1542_v12  ;;  %v1452_v35 = vmax.f32 %v1450_v59, %v1451_v42  ;;  %v4071_v59 = vld [vmem:[#allocation8_spill] sm:$0xff] }
 0x465   :  { %v3639_v51 = vpop.eup %2989  ;;  %v3641_v43 = vadd.f32 %v1593_v44, %v1592_v26  ;;  %v1536_v14 = vmul.f32 1.442695, %v1518_v55  ;;  %v1484_v33 = vrot.slane %v1483_v7, 2  ;;  %v1455_v62 = vmax.f32 %v1453_v2, %v1454_v45 }
 0x466   :  { %v3643_v24 = vadd.f32 %v1635_v18, %v1634_v38  ;;  %v1585_v37 = vsel %vm1403_vm8, %v3639_v51, 0.0  ;;  %v1522_v61 = vsub.f32 %v3585_v0, %v1452_v35  ;;  %v3649_v30 = vadd.f32 %v1366_v56, %v3306_v29 }
 0x467   :  { %v1595_v22 = vrot.slane %v3641_v43, 2  ;;  %v1586_v31 = vrot.slane %v1585_v37, 4  ;;  %2995 = vpow2.f32 %v1536_v14  ;;  %v1485_v27 = vmax.f32 %v1483_v7, %v1484_v33 }
 0x468   :  { %v3652_v34 = vpop.eup %2991  ;;  %v1637_v50 = vrot.slane %v3643_v24, 2  ;;  %v1544_v16 = vmul.f32 1.442695, %v1522_v61  ;;  %v1456_v11 = vrot.slane %v1455_v62, 2  ;;  %v1495_v6 = vsel %vm1403_vm8, %v3649_v30, -inf }
 0x469   :  { %v3657_v0 = vadd.f32 %v1586_v31, %v1585_v37  ;;  %v1648_v29 = vsel %vm1403_vm8, %v3652_v34, 0.0  ;;  %v1486_v2 = vrot.slane %v1485_v27, 1  ;;  %v1496_v49 = vrot.slane %v1495_v6, 4 }
 0x46a   :  { %v1649_v36 = vrot.slane %v1648_v29, 4  ;;  %2997 = vpow2.f32 %v1544_v16  ;;  %v1457_v1 = vmax.f32 %v1455_v62, %v1456_v11  ;;  %v3662_v28 = vadd.f32 %v1370_v52, %v3312_v23 }
 0x46b   :  { %v1588_v63 = vrot.slane %v3657_v0, 2  ;;  %v1487_v47 = vmax.f32 %v1485_v27, %v1486_v2  ;;  %v1497_v3 = vmax.f32 %v1495_v6, %v1496_v49  ;;  %v3666_v8 = vadd.f32 %v1368_v41, %v4071_v59 }
 0x46c   :  { %v3668_v7 = vadd.f32 %v1649_v36, %v1648_v29  ;;  %v1458_v45 = vrot.slane %v1457_v1, 1  ;;  %v1509_v26 = vsel %vm1403_vm8, %v3662_v28, -inf  ;;  %v1624_v12 = vadd.f32 %v1623_v4, %v3609_v17 }
 0x46d   :  { %v1527_v42 = vsub.f32 %v3591_v21, %v1487_v47  ;;  %v1498_v56 = vrot.slane %v1497_v3, 2  ;;  %v1510_v23 = vrot.slane %v1509_v26, 4  ;;  %v1502_v44 = vsel %vm1403_vm8, %v3666_v8, -inf }
 0x46e   :  { %v3676_v38 = vpop.eup %2993  ;;  %v1651_v55 = vrot.slane %v3668_v7, 2  ;;  %v1459_v18 = vmax.f32 %v1457_v1, %v1458_v45  ;;  %v1503_v35 = vrot.slane %v1502_v44, 4  ;;  %v1625_v14 = vrot.slane %v1624_v12, 1 }
 0x46f   :  { %v1599_v33 = vsel %vm1403_vm8, %v3676_v38, 0.0  ;;  %v1554_v62 = vmul.f32 1.442695, %v1527_v42  ;;  %v1499_v37 = vmax.f32 %v1497_v3, %v1498_v56  ;;  %v1511_v17 = vmax.f32 %v1509_v26, %v1510_v23 }
 0x470   :  { %v1600_v4 = vrot.slane %v1599_v33, 4  ;;  %v1523_v21 = vsub.f32 %v3598_v40, %v1459_v18  ;;  %v1504_v61 = vmax.f32 %v1502_v44, %v1503_v35  ;;  %v1626_v31 = vadd.f32 %v1625_v14, %v1624_v12 }
 0x471   :  { %v3682_v27 = vpop.eup %2995  ;;  %2999 = vpow2.f32 %v1554_v62  ;;  %v1500_v52 = vrot.slane %v1499_v37, 1  ;;  %v1512_v16 = vrot.slane %v1511_v17, 2  ;;  %v1568_v11 = vadd.f32 %v1567_v9, %v3615_v15 }
 0x472   :  { %v1601_v6 = vadd.f32 %v1600_v4, %v1599_v33  ;;  %v1578_v41 = vsel %vm1403_vm8, %v3682_v27, 0.0  ;;  %v1546_v29 = vmul.f32 1.442695, %v1523_v21  ;;  %v1505_v2 = vrot.slane %v1504_v61, 2 }
 0x473   :  { %v1579_v49 = vrot.slane %v1578_v41, 4  ;;  %v1501_v36 = vmax.f32 %v1499_v37, %v1500_v52  ;;  %v1513_v40 = vmax.f32 %v1511_v17, %v1512_v16  ;;  %3001 = vrcp.f32 %v1626_v31 }
 0x474   :  { %v3689_v1 = vpop.eup %2997  ;;  %v1602_v47 = vrot.slane %v1601_v6, 2  ;;  %3003 = vpow2.f32 %v1546_v29  ;;  %v1506_v3 = vmax.f32 %v1504_v61, %v1505_v2  ;;  %v1569_v59 = vrot.slane %v1568_v11, 1 }
 0x475   :  { %v1580_v45 = vadd.f32 %v1579_v49, %v1578_v41  ;;  %v1606_v15 = vsel %vm1403_vm8, %v3689_v1, 0.0  ;;  %v1529_v9 = vsub.f32 %v3649_v30, %v1501_v36  ;;  %v1514_v26 = vrot.slane %v1513_v40, 1 }
 0x476   :  { %v1607_v12 = vrot.slane %v1606_v15, 4  ;;  %v1507_v42 = vrot.slane %v1506_v3, 1  ;;  %v1570_v56 = vadd.f32 %v1569_v59, %v1568_v11  ;;  %v1631_v23 = vadd.f32 %v1630_v20, %v3630_v10 }
 0x477   :  { %v1581_v44 = vrot.slane %v1580_v45, 2  ;;  %v1558_v18 = vmul.f32 1.442695, %v1529_v9  ;;  %v1515_v35 = vmax.f32 %v1513_v40, %v1514_v26  ;;  %v1596_v14 = vadd.f32 %v1595_v22, %v3641_v43 }
 0x478   :  { %v1608_v33 = vadd.f32 %v1607_v12, %v1606_v15  ;;  %v1508_v62 = vmax.f32 %v1506_v3, %v1507_v42  ;;  %3005 = vrcp.f32 %v1570_v56  ;;  %v1632_v37 = vrot.slane %v1631_v23, 1 }
 0x479   :  { %3007 = vpow2.f32 %v1558_v18  ;;  %v1531_v30 = vsub.f32 %v3662_v28, %v1515_v35  ;;  %v1597_v17 = vrot.slane %v1596_v14, 1  ;;  %v1638_v4 = vadd.f32 %v1637_v50, %v3643_v24 }
 0x47a   :  { %v1609_v10 = vrot.slane %v1608_v33, 2  ;;  %v1530_v20 = vsub.f32 %v3666_v8, %v1508_v62  ;;  %v1633_v21 = vadd.f32 %v1632_v37, %v1631_v23  ;;  %v1589_v43 = vadd.f32 %v1588_v63, %v3657_v0 }
 0x47b   :  { %v3708_v22 = vpop.eup %2999  ;;  %v1562_v61 = vmul.f32 1.442695, %v1531_v30  ;;  %v1598_v31 = vadd.f32 %v1597_v17, %v1596_v14  ;;  %v1639_v52 = vrot.slane %v1638_v4, 1  ;;  %v1652_v28 = vadd.f32 %v1651_v55, %v3668_v7 }
 0x47c   :  { %v1641_v16 = vsel %vm1403_vm8, %v3708_v22, 0.0  ;;  %v1560_v11 = vmul.f32 1.442695, %v1530_v20  ;;  %3009 = vrcp.f32 %v1633_v21  ;;  %v1590_v24 = vrot.slane %v1589_v43, 1 }
 0x47d   :  { %v3002_v50 = vpop.eup %3001  ;;  %v1642_v8 = vrot.slane %v1641_v16, 4  ;;  %3011 = vpow2.f32 %v1562_v61  ;;  %v1640_v41 = vadd.f32 %v1639_v52, %v1638_v4  ;;  %v1653_v29 = vrot.slane %v1652_v28, 1 }
 0x47e   :  { %v3713_v2 = vpop.eup %3003  ;;  %3013 = vpow2.f32 %v1560_v11  ;;  %v3716_v0 = vmul.f32 %v3002_v50, %v3593_v13  ;;  %v1591_v63 = vadd.f32 %v1590_v24, %v1589_v43  ;;  %v1603_v49 = vadd.f32 %v1602_v47, %v1601_v6 }
 0x47f   :  { %v1643_v7 = vadd.f32 %v1642_v8, %v1641_v16  ;;  %v1613_v55 = vsel %vm1403_vm8, %v3713_v2, 0.0  ;;  %3015 = vrcp.f32 %v1598_v31  ;;  %v1654_v36 = vadd.f32 %v1653_v29, %v1652_v28 }
 0x480   :  { %v1614_v40 = vrot.slane %v1613_v55, 4  ;;  %1950 = vperm.xlu0 %2940, %v3716_v0   ;;  %3017 = vrcp.f32 %v1640_v41  ;;  %v1604_v3 = vrot.slane %v1603_v49, 1  ;;  %v1575_v59 = vadd.f32 %v1574_v53, %v3626_v48 }
 0x481   :  { %v1644_v15 = vrot.slane %v1643_v7, 2  ;;  %3019 = vrcp.f32 %v1591_v63  ;;  %v1610_v13 = vadd.f32 %v1609_v10, %v1608_v33  ;;  %v1582_v9 = vadd.f32 %v1581_v44, %v1580_v45 }
 0x482   :  { %v3006_v6 = vpop.eup %3005  ;;  %v1615_v47 = vadd.f32 %v1614_v40, %v1613_v55  ;;  %3021 = vrcp.f32 %v1654_v36  ;;  %v1605_v26 = vadd.f32 %v1604_v3, %v1603_v49  ;;  %v1576_v12 = vrot.slane %v1575_v59, 1 }
 0x483   :  { %v3724_v42 = vpop.eup %3007  ;;  %v3727_v56 = vmul.f32 %v3006_v6, %v3600_v46  ;;  %v1611_v23 = vrot.slane %v1610_v13, 1  ;;  %v1583_v18 = vrot.slane %v1582_v9, 1  ;;  %v1645_v35 = vadd.f32 %v1644_v15, %v1643_v7 }
 0x484   :  { %v1616_v14 = vrot.slane %v1615_v47, 2  ;;  %v1655_v48 = vsel %vm1403_vm8, %v3724_v42, 0.0  ;;  %3023 = vrcp.f32 %v1605_v26  ;;  %v1577_v53 = vadd.f32 %v1576_v12, %v1575_v59 }
 0x485   :  { %v1656_v45 = vrot.slane %v1655_v48, 4  ;;  %1918 = vperm.xlu0 %2940, %v3727_v56   ;;  %v1612_v44 = vadd.f32 %v1611_v23, %v1610_v13  ;;  %v1646_v33 = vrot.slane %v1645_v35, 1  ;;  %v1584_v37 = vadd.f32 %v1583_v18, %v1582_v9 }
 0x486   :  { %v3010_v62 = vpop.eup %3009  ;;  %3025 = vrcp.f32 %v1577_v53  ;;  %v1617_v30 = vadd.f32 %v1616_v14, %v1615_v47 }
 0x487   :  { %v3732_v46 = vpop.eup %3011  ;;  %v1657_v17 = vadd.f32 %v1656_v45, %v1655_v48  ;;  %v3735_v4 = vmul.f32 %v3010_v62, %v3613_v57  ;;  %3027 = vrcp.f32 %v1612_v44  ;;  %v1647_v28 = vadd.f32 %v1646_v33, %v1645_v35 }
 0x488   :  { %v3737_v10 = vpop.eup %3013  ;;  %v1669_v20 = vsel %vm1403_vm8, %v3732_v46, 0.0  ;;  %v1618_v21 = vrot.slane %v1617_v30, 1  ;;  %3029 = vrcp.f32 %v1584_v37  ;;  %v3095_v62 = vmov 8  }
 0x489   :  { %v3016_v43 = vpop.eup %3015  ;;  %v1658_v61 = vrot.slane %v1657_v17, 2  ;;  %v1670_v31 = vrot.slane %v1669_v20, 4  ;;  %v1662_v52 = vsel %vm1403_vm8, %v3737_v10, 0.0  ;;  %1954 = vperm.xlu1 %2941, %v3735_v4  }
 0x48a   :  { %v3018_v16 = vpop.eup %3017  ;;  %v1663_v11 = vrot.slane %v1662_v52, 4  ;;  %v3745_v57 = vmul.f32 %v3016_v43, %v3624_v25  ;;  %v1619_v24 = vadd.f32 %v1618_v21, %v1617_v30 }
 0x48b   :  { %v3020_v50 = vpop.eup %3019  ;;  %v1671_v8 = vadd.f32 %v1670_v31, %v1669_v20  ;;  %v1702_v41 = vmul.f32 %v3018_v16, %v3628_v5  ;;  %v1659_v29 = vadd.f32 %v1658_v61, %v1657_v17 }
 0x48c   :  { %v3022_v63 = vpop.eup %3021  ;;  %v1664_v49 = vadd.f32 %v1663_v11, %v1662_v52  ;;  %1934 = vperm.xlu0 %2940, %v3745_v57   ;;  %v1695_v7 = vmul.f32 %v3020_v50, %v3639_v51  ;;  %3031 = vrcp.f32 %v1619_v24  ;;  %v4081_v50 = vld [vmem:[#allocation29_spill] sm:$0xff] }
 0x48d   :  { %v1672_v55 = vrot.slane %v1671_v8, 2  ;;  %1958 = vperm.xlu1 %2941, %v1702_v41   ;;  %v1704_v36 = vmul.f32 %v3022_v63, %v3652_v34  ;;  %v1660_v25 = vrot.slane %v1659_v29, 1  ;;  %3033 = vrcp.f32 %v1647_v28  ;;  %v4082_v63 = vld [vmem:[#allocation20_spill] sm:$0xff] }
 0x48e   :  { %v3024_v40 = vpop.eup %3023  ;;  %v1665_v3 = vrot.slane %v1664_v49, 2 }
 0x48f   :  { %v1673_v59 = vadd.f32 %v1672_v55, %v1671_v8  ;;  %v1661_v15 = vadd.f32 %v1660_v25, %v1659_v29  ;;  %v1697_v5 = vmul.f32 %v3024_v40, %v3676_v38 }
 0x490   :  { %v3026_v13 = vpop.eup %3025  ;;  %1930 = vperm.xlu0 %2940, %v1695_v7   ;;  %v1666_v9 = vadd.f32 %v1665_v3, %v1664_v49  ;;  %v4083_v49 = vmax.f32 %v4082_v63, 0.0 }
 0x491   :  { %v3028_v6 = vpop.eup %3027  ;;  %1966 = vperm.xlu1 %2941, %v1704_v36   ;;  %v1674_v47 = vrot.slane %v1673_v59, 1  ;;  %3035 = vrcp.f32 %v1661_v15  ;;  %v1693_v26 = vmul.f32 %v3026_v13, %v3607_v58 }
 0x492   :  { %v1667_v51 = vrot.slane %v1666_v9, 1  ;;  %v3030_v34 = vpop.eup %3029  ;;  %v1698_v23 = vmul.f32 %v3028_v6, %v3689_v1 }
 0x493   :  { %v1675_v12 = vadd.f32 %v1674_v47, %v1673_v59  ;;  %v1694_v38 = vmul.f32 %v3030_v34, %v3682_v27  ;;  %v4089_v47 = vld [vmem:[#allocation28_spill] sm:$0xff] }
 0x494   :  { %1938 = vperm.xlu0 %2940, %v1697_v5   ;;  %v1668_v18 = vadd.f32 %v1667_v51, %v1666_v9  ;;  %v4087_v9 = vld [vmem:[#allocation11_spill] sm:$0xff] }
 0x495   :  { %1922 = vperm.xlu1 %2941, %v1693_v26   ;;  %3037 = vrcp.f32 %v1675_v12  ;;  %v4088_v6 = vmax.f32 %v4087_v9, 0.0  ;;  %v4090_v12 = vld [vmem:[#allocation13_spill] sm:$0xff] }
 0x496   :  { %v3032_v35 = vpop.eup %3031  ;;  %3039 = vrcp.f32 %v1668_v18  ;;  %v4091_v34 = vmax.f32 %v4090_v12, 0.0 }
 0x497   :  { %v3034_v14 = vpop.eup %3033  ;;  %v1699_v48 = vmul.f32 %v3032_v35, %v3713_v2  ;;  %v3806_v51 = vmul.f32 %v4089_v47, %v4088_v6  ;;  %v4093_v35 = vld [vmem:[#allocation12_spill] sm:$0xff] }
 0x498   :  { %1942 = vperm.xlu0 %2940, %v1698_v23   ;;  %v1703_v53 = vmul.f32 %v3034_v14, %v3708_v22  ;;  %v4072_v22 = vld [vmem:[#allocation18_spill] sm:$0xff]  ;;  %v4095_v14 = vld [vmem:[#allocation25_spill] sm:$0xff] }
 0x499   :  { %1926 = vperm.xlu1 %2941, %v1694_v38   ;;  %v4073_v2 = vmax.f32 %v4072_v22, 0.0  ;;  %v4100_v22 = vld [vmem:[#allocation33_spill] sm:$0xff] }
 0x49b   :  { %v3036_v58 = vpop.eup %3035 }
 0x49c   :  { %1946 = vperm.xlu0 %2940, %v1699_v48   ;;  %v1705_v1 = vmul.f32 %v3036_v58, %v3724_v42  ;;  %v3768_v42 = vmul.f32 %v3405_v19, %v4073_v2  ;;  %v4077_v19 = vld [vmem:[#allocation17_spill] sm:$0xff] }
 0x49d   :  { %1962 = vperm.xlu1 %2941, %v1703_v53   ;;  %v4078_v61 = vmax.f32 %v4077_v19, 0.0 }
 0x49f   :  { %v3038_v45 = vpop.eup %3037  ;;  %v3782_v31 = vmul.f32 %v3411_v32, %v4078_v61  ;;  %v4084_v32 = vld [vmem:[#allocation9_spill] sm:$0xff] }
 0x4a0   :  { %v3040_v44 = vpop.eup %3039  ;;  %v1707_v33 = vmul.f32 %v3038_v45, %v3732_v46  ;;  %v4074_v46 = vld [vmem:[#allocation10_spill] sm:$0xff]  ;;  %v4085_v55 = vmax.f32 %v4084_v32, 0.0 }
 0x4a1   :  { %1970 = vperm.xlu1 %2941, %v1705_v1   ;;  %v1706_v27 = vmul.f32 %v3040_v44, %v3737_v10  ;;  %v4075_v17 = vmax.f32 %v4074_v46, 0.0  ;;  %v4101_v46 = vld [vmem:[#allocation16_spill] sm:$0xff] }
 0x4a2   :  { %1978 = vperm.xlu0 %2940, %v1707_v33  }
 0x4a5   :  { %1974 = vperm.xlu1 %2941, %v1706_v27  }
 0x4a6   :  { %2943 = vset.pattern.permute.xlu0 %v3095_v62 }
 0x4a7   :  { %1715 = vperm.xlu0 %2943, %v1693_v26  }
 0x4a9   :  { %2942 = vset.pattern.permute.xlu1 %v3095_v62 }
 0x4aa   :  { %1710 = vperm.xlu1 %2942, %v3727_v56  }
 0x4ab   :  { %1755 = vperm.xlu0 %2943, %v3735_v4   ;;  %v4076_v4 = vld [vmem:[#allocation26_spill] sm:$0xff] }
 0x4ac   :  { %v3775_v10 = vmul.f32 %v4076_v4, %v4075_v17  ;;  %v4102_v17 = vmax.f32 %v4101_v46, 0.0  ;;  %v4103_v4 = vld [vmem:[#allocation32_spill] sm:$0xff] }
 0x4ae   :  { %1720 = vperm.xlu1 %2942, %v1694_v38   ;;  %v4094_v38 = vmax.f32 %v4093_v35, 0.0 }
 0x4af   :  { %1760 = vperm.xlu0 %2943, %v1702_v41  }
 0x4b2   :  { %1750 = vperm.xlu1 %2942, %v3716_v0  }
 0x4b3   :  { %1765 = vperm.xlu0 %2943, %v1703_v53   ;;  %v4096_v53 = vld [vmem:[#allocation15_spill] sm:$0xff] }
 0x4b4   :  { %v4097_v58 = vmax.f32 %v4096_v53, 0.0 }
 0x4b6   :  { %1725 = vperm.xlu1 %2942, %v1695_v7   ;;  %v3794_v7 = vmul.f32 %v3415_v39, %v4083_v49  ;;  %v3822_v45 = vmul.f32 %v3425_v54, %v4097_v58 }
 0x4b7   :  { %1770 = vperm.xlu0 %2943, %v1704_v36   ;;  %v4086_v36 = vld [vmem:[#allocation27_spill] sm:$0xff] }
 0x4b8   :  { %v3799_v25 = vmul.f32 %v4086_v36, %v4085_v55 }
 0x4ba   :  { %1730 = vperm.xlu1 %2942, %v3745_v57   ;;  %v4079_v57 = vld [vmem:[#allocation14_spill] sm:$0xff] }
 0x4bb   :  { %1775 = vperm.xlu0 %2943, %v1705_v1   ;;  %v4080_v24 = vmax.f32 %v4079_v57, 0.0 }
 0x4bd   :  { %v3788_v8 = vmul.f32 %v4081_v50, %v4080_v24  ;;  %v4107_v24 = vld [vmem:[#allocation21_spill] sm:$0xff] }
 0x4be   :  { %1735 = vperm.xlu1 %2942, %v1697_v5   ;;  %v4108_v50 = vmax.f32 %v4107_v24, 0.0 }
 0x4bf   :  { %1780 = vperm.xlu0 %2943, %v1706_v27   ;;  %v4098_v27 = vld [vmem:[#allocation22_spill] sm:$0xff] }
 0x4c0   :  { %v4099_v62 = vmax.f32 %v4098_v27, 0.0  ;;  %v4110_v27 = vld [vmem:[#allocation23_spill] sm:$0xff] }
 0x4c2   :  { %1740 = vperm.xlu1 %2942, %v1698_v23   ;;  %v4092_v23 = vld [vmem:[#allocation30_spill] sm:$0xff]  ;;  %v3828_v2 = vmul.f32 %v4100_v22, %v4099_v62  ;;  %v4111_v62 = vmax.f32 %v4110_v27, 0.0  ;;  %v4112_v22 = vld [vmem:[#allocation35_spill] sm:$0xff] }
 0x4c3   :  { %2944 = vset.pattern.permute.xlu0 %v3094_v60  ;;  %v3812_v18 = vmul.f32 %v4092_v23, %v4091_v34 }
 0x4c6   :  { %1745 = vperm.xlu1 %2942, %v1699_v48   ;;  %v3817_v48 = vmul.f32 %v4095_v14, %v4094_v38 }
 0x4ca   :  { %1785 = vperm.xlu1 %2942, %v1707_v33  }
 0x4ff   :  { %v1951_v0 = vpop.permute.xlu0 %1950 }
 0x500   :  { %v1989_v56 = vmul.f32 %v1951_v0, %v3768_v42 }
 0x502   :  { %v2053_v37 = vsel %vm1804_vm9, %v1989_v56, 0.0 }
 0x503   :  { %v2054_v30 = vrot.slane %v2053_v37, 4 }
 0x504   :  { %v1919_v60 = vpop.permute.xlu0 %1918 }
 0x505   :  { %v2055_v20 = vadd.f32 %v2054_v30, %v2053_v37  ;;  %v1981_v21 = vmul.f32 %v1919_v60, %v3775_v10  ;;  %v3834_v60 = vmul.f32 %v4103_v4, %v4102_v17 }
 0x507   :  { %v1997_v43 = vsel %vm1804_vm9, %v1981_v21, 0.0  ;;  %v2056_v28 = vrot.slane %v2055_v20, 2 }
 0x508   :  { %v1955_v52 = vpop.permute.xlu1 %1954  ;;  %v1998_v16 = vrot.slane %v1997_v43, 4 }
 0x509   :  { %v1990_v11 = vmul.f32 %v1955_v52, %v3782_v31  ;;  %v2057_v15 = vadd.f32 %v2056_v28, %v2055_v20  ;;  %v4104_v28 = vld [vmem:[#allocation19_spill] sm:$0xff] }
 0x50a   :  { %v1999_v13 = vadd.f32 %v1998_v16, %v1997_v43  ;;  %v4105_v16 = vmax.f32 %v4104_v28, 0.0 }
 0x50b   :  { %v2060_v41 = vsel %vm1804_vm9, %v1990_v11, 0.0  ;;  %v1935_v29 = vpop.permute.xlu0 %1934  ;;  %v2058_v54 = vrot.slane %v2057_v15, 1  ;;  %v4106_v11 = vld [vmem:[#allocation31_spill] sm:$0xff] }
 0x50c   :  { %v2061_v40 = vrot.slane %v2060_v41, 4  ;;  %v1985_v3 = vmul.f32 %v1935_v29, %v3788_v8  ;;  %v1959_v59 = vpop.permute.xlu1 %1958  ;;  %v2000_v20 = vrot.slane %v1999_v13, 2  ;;  %v3841_v57 = vmul.f32 %v4106_v11, %v4105_v16  ;;  %v4115_v16 = vld [vmem:[#allocation36_spill] sm:$0xff] }
 0x50d   :  { %v1991_v5 = vmul.f32 %v1959_v59, %v3794_v7  ;;  %v2059_v9 = vadd.f32 %v2058_v54, %v2057_v15 }
 0x50e   :  { %v2062_v39 = vadd.f32 %v2061_v40, %v2060_v41  ;;  %v2025_v26 = vsel %vm1804_vm9, %v1985_v3, 0.0  ;;  %v4109_v41 = vld [vmem:[#allocation34_spill] sm:$0xff]  ;;  %v2001_v6 = vadd.f32 %v2000_v20, %v1999_v13 }
 0x50f   :  { %v2026_v1 = vrot.slane %v2025_v26, 4  ;;  %v2067_v44 = vsel %vm1804_vm9, %v1991_v5, 0.0  ;;  %v1931_v33 = vpop.permute.xlu0 %1930  ;;  %v3846_v29 = vmul.f32 %v4109_v41, %v4108_v50 }
 0x510   :  { %v2063_v0 = vrot.slane %v2062_v39, 2  ;;  %v2068_v56 = vrot.slane %v2067_v44, 4  ;;  %v1984_v37 = vmul.f32 %v1931_v33, %v3806_v51  ;;  %v1967_v30 = vpop.permute.xlu1 %1966  ;;  %v2002_v46 = vrot.slane %v2001_v6, 1 }
 0x511   :  { %v2027_v21 = vadd.f32 %v2026_v1, %v2025_v26  ;;  %v1993_v43 = vmul.f32 %v1967_v30, %v3828_v2 }
 0x512   :  { %v2064_v19 = vadd.f32 %v2063_v0, %v2062_v39  ;;  %v2069_v61 = vadd.f32 %v2068_v56, %v2067_v44  ;;  %v2018_v52 = vsel %vm1804_vm9, %v1984_v37, 0.0  ;;  %v3857_v0 = vmul.f32 %v4112_v22, %v4111_v62 }
 0x513   :  { %v2028_v63 = vrot.slane %v2027_v21, 2  ;;  %v2019_v49 = vrot.slane %v2018_v52, 4  ;;  %v2081_v32 = vsel %vm1804_vm9, %v1993_v43, 0.0  ;;  %v1939_v55 = vpop.permute.xlu0 %1938 }
 0x514   :  { %v2065_v36 = vrot.slane %v2064_v19, 1  ;;  %v2070_v40 = vrot.slane %v2069_v61, 2  ;;  %v2082_v3 = vrot.slane %v2081_v32, 4  ;;  %v1986_v59 = vmul.f32 %v1939_v55, %v3812_v18  ;;  %v1923_v5 = vpop.permute.xlu1 %1922 }
 0x515   :  { %v2020_v47 = vadd.f32 %v2019_v49, %v2018_v52  ;;  %v1982_v39 = vmul.f32 %v1923_v5, %v3799_v25  ;;  %v2029_v35 = vadd.f32 %v2028_v63, %v2027_v21  ;;  %v4113_v52 = vld [vmem:[#allocation24_spill] sm:$0xff] }
 0x516   :  { %v2066_v26 = vadd.f32 %v2065_v36, %v2064_v19  ;;  %v2071_v12 = vadd.f32 %v2070_v40, %v2069_v61  ;;  %v2083_v34 = vadd.f32 %v2082_v3, %v2081_v32  ;;  %v2032_v23 = vsel %vm1804_vm9, %v1986_v59, 0.0 }
 0x517   :  { %v2021_v38 = vrot.slane %v2020_v47, 2  ;;  %v2033_v14 = vrot.slane %v2032_v23, 4  ;;  %v2004_v53 = vsel %vm1804_vm9, %v1982_v39, 0.0  ;;  %v1943_v58 = vpop.permute.xlu0 %1942  ;;  %v2030_v20 = vrot.slane %v2029_v35, 1 }
 0x518   :  { %v2164_v1 = vsel %vm1077_vm1, %v2066_v26, %v2059_v9  ;;  %v2072_v44 = vrot.slane %v2071_v12, 1  ;;  %v2084_v33 = vrot.slane %v2083_v34, 2  ;;  %v2005_v15 = vrot.slane %v2004_v53, 4  ;;  %v1927_v13 = vpop.permute.xlu1 %1926 }
 0x519   :  { %v2022_v56 = vadd.f32 %v2021_v38, %v2020_v47  ;;  %v2034_v37 = vadd.f32 %v2033_v14, %v2032_v23  ;;  %v1987_v30 = vmul.f32 %v1943_v58, %v3834_v60  ;;  %v1983_v54 = vmul.f32 %v1927_v13, %v3817_v48 }
 0x51a   :  { %v2073_v17 = vadd.f32 %v2072_v44, %v2071_v12  ;;  %v2006_v4 = vadd.f32 %v2005_v15, %v2004_v53  ;;  %v2085_v21 = vadd.f32 %v2084_v33, %v2083_v34  ;;  %v4114_v28 = vmax.f32 %v4113_v52, 0.0 }
 0x51b   :  { %v2035_v43 = vrot.slane %v2034_v37, 2  ;;  %v2039_v19 = vsel %vm1804_vm9, %v1987_v30, 0.0  ;;  %v1947_v61 = vpop.permute.xlu0 %1946  ;;  %v2023_v49 = vrot.slane %v2022_v56, 1  ;;  %v2011_v55 = vsel %vm1804_vm9, %v1983_v54, 0.0 }
 0x51c   :  { %v3865_v11 = vmul.f32 %v4115_v16, %v4114_v28  ;;  %v3868_v24 = vsel %vm1079_vm2, %v2073_v17, %v2164_v1  ;;  %v2007_v50 = vrot.slane %v2006_v4, 2  ;;  %v2040_v41 = vrot.slane %v2039_v19, 4  ;;  %v1963_v63 = vpop.permute.xlu1 %1962 }
 0x51d   :  { %v2036_v32 = vadd.f32 %v2035_v43, %v2034_v37  ;;  %v1988_v36 = vmul.f32 %v1947_v61, %v3822_v45  ;;  %v2003_v40 = vadd.f32 %v2002_v46, %v2001_v6  ;;  %v2012_v5 = vrot.slane %v2011_v55, 4 }
 0x51e   :  { %v2008_v3 = vadd.f32 %v2007_v50, %v2006_v4  ;;  %v2041_v59 = vadd.f32 %v2040_v41, %v2039_v19  ;;  %v3872_v9 = vadd.f32 %v2030_v20, %v2029_v35  ;;  %v2086_v47 = vrot.slane %v2085_v21, 1 }
 0x51f   :  { %v2046_v39 = vsel %vm1804_vm9, %v1988_v36, 0.0  ;;  %v1992_v26 = vmul.f32 %v1963_v63, %v3841_v57  ;;  %v2013_v23 = vadd.f32 %v2012_v5, %v2011_v55  ;;  %v3876_v53 = vadd.f32 %v2023_v49, %v2022_v56 }
 0x520   :  { %v2009_v12 = vrot.slane %v2008_v3, 1  ;;  %v2042_v34 = vrot.slane %v2041_v59, 2  ;;  %v2047_v38 = vrot.slane %v2046_v39, 4  ;;  %v1971_v14 = vpop.permute.xlu1 %1970  ;;  %v2037_v58 = vrot.slane %v2036_v32, 1 }
 0x521   :  { %v2074_v6 = vsel %vm1804_vm9, %v1992_v26, 0.0  ;;  %v1979_v1 = vpop.permute.xlu0 %1978  ;;  %v1994_v44 = vmul.f32 %v1971_v14, %v3846_v29  ;;  %v2014_v15 = vrot.slane %v2013_v23, 2  ;;  %v3880_v27 = vadd.f32 %v2086_v47, %v2085_v21  ;;  %v2179_v14 = vld [vmem:[#allocation2 + $0x200] sm:$0xff] }
 0x522   :  { %v2010_v35 = vadd.f32 %v2009_v12, %v2008_v3  ;;  %v2043_v33 = vadd.f32 %v2042_v34, %v2041_v59  ;;  %v2048_v13 = vadd.f32 %v2047_v38, %v2046_v39  ;;  %v2075_v62 = vrot.slane %v2074_v6, 4  ;;  %2729 = vmatprep.subr.mxu1 %v2179_v14 }
 0x523   :  { %v1996_v22 = vmul.f32 %v1979_v1, %v3857_v0  ;;  %v2088_v37 = vsel %vm1804_vm9, %v1994_v44, 0.0  ;;  %v2015_v46 = vadd.f32 %v2014_v15, %v2013_v23  ;;  %v3887_v61 = vadd.f32 %v2037_v58, %v2036_v32  ;;  %2730 = vmatpush3.msra.mxu1 %v2179_v14 }
 0x524   :  { %v2157_v56 = vsel %vm1077_vm1, %v2010_v35, %v2003_v40  ;;  %v2044_v30 = vrot.slane %v2043_v33, 1  ;;  %v2049_v17 = vrot.slane %v2048_v13, 2  ;;  %v1975_v4 = vpop.permute.xlu1 %1974  ;;  %v2076_v54 = vadd.f32 %v2075_v62, %v2074_v6 }
 0x525   :  { %v2102_v20 = vsel %vm1804_vm9, %v1996_v22, 0.0  ;;  %v2089_v43 = vrot.slane %v2088_v37, 4  ;;  %v1995_v19 = vmul.f32 %v1975_v4, %v3865_v11  ;;  %v2016_v21 = vrot.slane %v2015_v46, 1 }
 0x526   :  { %v2050_v52 = vadd.f32 %v2049_v17, %v2048_v13  ;;  %v2103_v28 = vrot.slane %v2102_v20, 4  ;;  %v1716_v16 = vpop.permute.xlu0 %1715  ;;  %v2077_v50 = vrot.slane %v2076_v54, 2  ;;  %v2045_v59 = vadd.f32 %v2044_v30, %v2043_v33 }
 0x527   :  { %v2090_v41 = vadd.f32 %v2089_v43, %v2088_v37  ;;  %v1789_v63 = vmul.f32 %v1716_v16, %v3799_v25  ;;  %v2095_v49 = vsel %vm1804_vm9, %v1995_v19, 0.0  ;;  %v2017_v55 = vadd.f32 %v2016_v21, %v2015_v46 }
 0x528   :  { %v2051_v36 = vrot.slane %v2050_v52, 1  ;;  %v2104_v40 = vadd.f32 %v2103_v28, %v2102_v20  ;;  %v2096_v3 = vrot.slane %v2095_v49, 4  ;;  %v2078_v5 = vadd.f32 %v2077_v50, %v2076_v54 }
 0x529   :  { %v2091_v47 = vrot.slane %v2090_v41, 2  ;;  %v1812_v32 = vsel %vm1804_vm9, %v1789_v63, 0.0  ;;  %v1711_v39 = vpop.permute.xlu1 %1710  ;;  %v2158_v26 = vsel %vm1079_vm2, %v2017_v55, %v2157_v56 }
 0x52a   :  { %v2105_v12 = vrot.slane %v2104_v40, 2  ;;  %v1813_v34 = vrot.slane %v1812_v32, 4  ;;  %v2097_v23 = vadd.f32 %v2096_v3, %v2095_v49  ;;  %v1756_v38 = vpop.permute.xlu0 %1755  ;;  %v2079_v25 = vrot.slane %v2078_v5, 1 }
 0x52b   :  { %v2092_v58 = vadd.f32 %v2091_v47, %v2090_v41  ;;  %v1797_v6 = vmul.f32 %v1756_v38, %v3782_v31  ;;  %v1788_v1 = vmul.f32 %v1711_v39, %v3775_v10  ;;  %v2052_v15 = vadd.f32 %v2051_v36, %v2050_v52 }
 0x52c   :  { %v3895_v44 = vadd.f32 %v2105_v12, %v2104_v40  ;;  %v1814_v35 = vadd.f32 %v1813_v34, %v1812_v32  ;;  %v2098_v33 = vrot.slane %v2097_v23, 2  ;;  %v3897_v13 = vadd.f32 %v2079_v25, %v2078_v5 }
 0x52d   :  { %v2093_v62 = vrot.slane %v2092_v58, 1  ;;  %v1868_v22 = vsel %vm1804_vm9, %v1797_v6, 0.0  ;;  %v1805_v37 = vsel %vm1804_vm9, %v1788_v1, 0.0  ;;  %v1721_v56 = vpop.permute.xlu1 %1720  ;;  %v2159_v28 = vsel %vm1081_vm3, %v3876_v53, %v2158_v26 }
 0x52e   :  { %v2107_v30 = vrot.slane %v3895_v44, 1  ;;  %v1815_v31 = vrot.slane %v1814_v35, 2  ;;  %v2099_v46 = vadd.f32 %v2098_v33, %v2097_v23  ;;  %v1869_v10 = vrot.slane %v1868_v22, 4  ;;  %v1761_v17 = vpop.permute.xlu0 %1760 }
 0x52f   :  { %v3902_v4 = vadd.f32 %v2093_v62, %v2092_v58  ;;  %v1806_v54 = vrot.slane %v1805_v37, 4  ;;  %v1798_v20 = vmul.f32 %v1761_v17, %v3794_v7  ;;  %v1790_v43 = vmul.f32 %v1721_v56, %v3817_v48 }
 0x530   :  { %v1816_v19 = vadd.f32 %v1815_v31, %v1814_v35  ;;  %v2100_v21 = vrot.slane %v2099_v46, 1  ;;  %v1870_v52 = vadd.f32 %v1869_v10, %v1868_v22  ;;  %v2160_v63 = vsel %vm1083_vm4, %v3872_v9, %v2159_v28 }
 0x531   :  { %v1807_v16 = vadd.f32 %v1806_v54, %v1805_v37  ;;  %v1875_v50 = vsel %vm1804_vm9, %v1798_v20, 0.0  ;;  %v1819_v41 = vsel %vm1804_vm9, %v1790_v43, 0.0  ;;  %v1751_v49 = vpop.permute.xlu1 %1750  ;;  %v2161_v53 = vsel %vm1085_vm5, %v3887_v61, %v2160_v63 }
 0x532   :  { %v1817_v55 = vrot.slane %v1816_v19, 1  ;;  %v3912_v36 = vadd.f32 %v2100_v21, %v2099_v46  ;;  %v1871_v7 = vrot.slane %v1870_v52, 2  ;;  %v1876_v48 = vrot.slane %v1875_v50, 4  ;;  %v1766_v40 = vpop.permute.xlu0 %1765 }
 0x533   :  { %v1808_v3 = vrot.slane %v1807_v16, 2  ;;  %v1820_v5 = vrot.slane %v1819_v41, 4  ;;  %v1799_v47 = vmul.f32 %v1766_v40, %v3841_v57  ;;  %v2162_v12 = vsel %vm1087_vm6, %v2045_v59, %v2161_v53 }
 0x534   :  { %v1818_v32 = vadd.f32 %v1817_v55, %v1816_v19  ;;  %v1872_v39 = vadd.f32 %v1871_v7, %v1870_v52  ;;  %v1877_v26 = vadd.f32 %v1876_v48, %v1875_v50  ;;  %v2163_v23 = vsel %vm1089_vm7, %v2052_v15, %v2162_v12 }
 0x535   :  { %v1809_v9 = vadd.f32 %v1808_v3, %v1807_v16  ;;  %v1821_v34 = vadd.f32 %v1820_v5, %v1819_v41  ;;  %v1882_v38 = vsel %vm1804_vm9, %v1799_v47, 0.0  ;;  %v1726_v14 = vpop.permute.xlu1 %1725  ;;  %2171 = vrot.lane.b32.xlu0 %v2163_v23, %s3096_s19  ;;  %v1796_v57 = vmul.f32 %v1751_v49, %v3768_v42 }
 0x536   :  { %v1873_v25 = vrot.slane %v1872_v39, 1  ;;  %v1878_v58 = vrot.slane %v1877_v26, 2  ;;  %v1883_v61 = vrot.slane %v1882_v38, 4  ;;  %v1771_v6 = vpop.permute.xlu0 %1770  ;;  %v1791_v33 = vmul.f32 %v1726_v14, %v3806_v51 }
 0x537   :  { %v1810_v1 = vrot.slane %v1809_v9, 1  ;;  %v1822_v35 = vrot.slane %v1821_v34, 2  ;;  %v1800_v59 = vmul.f32 %v1771_v6, %v3828_v2  ;;  %v1861_v37 = vsel %vm1804_vm9, %v1796_v57, 0.0 }
 0x538   :  { %v1874_v62 = vadd.f32 %v1873_v25, %v1872_v39  ;;  %v1879_v15 = vadd.f32 %v1878_v58, %v1877_v26  ;;  %v1884_v22 = vadd.f32 %v1883_v61, %v1882_v38  ;;  %v1862_v46 = vrot.slane %v1861_v37, 4 }
 0x539   :  { %v1811_v56 = vadd.f32 %v1810_v1, %v1809_v9  ;;  %v1823_v31 = vadd.f32 %v1822_v35, %v1821_v34  ;;  %v1889_v10 = vsel %vm1804_vm9, %v1800_v59, 0.0  ;;  %v1731_v17 = vpop.permute.xlu1 %1730  ;;  %v1826_v43 = vsel %vm1804_vm9, %v1791_v33, 0.0 }
 0x53a   :  { %v1880_v54 = vrot.slane %v1879_v15, 1  ;;  %v1885_v42 = vrot.slane %v1884_v22, 2  ;;  %v1890_v20 = vrot.slane %v1889_v10, 4  ;;  %v1776_v19 = vpop.permute.xlu0 %1775  ;;  %v1863_v21 = vadd.f32 %v1862_v46, %v1861_v37 }
 0x53b   :  { %v2125_v2 = vsel %vm1077_vm1, %v1818_v32, %v1811_v56  ;;  %v1824_v51 = vrot.slane %v1823_v31, 1  ;;  %v1827_v52 = vrot.slane %v1826_v43, 4  ;;  %v2108_v41 = vadd.f32 %v2107_v30, %v3895_v44 }
 0x53c   :  { %v1881_v28 = vadd.f32 %v1880_v54, %v1879_v15  ;;  %v1886_v16 = vadd.f32 %v1885_v42, %v1884_v22  ;;  %v1891_v50 = vadd.f32 %v1890_v20, %v1889_v10  ;;  %v1864_v49 = vrot.slane %v1863_v21, 2 }
 0x53d   :  { %v1825_v63 = vadd.f32 %v1824_v51, %v1823_v31  ;;  %v1828_v55 = vadd.f32 %v1827_v52, %v1826_v43  ;;  %v2166_v7 = vsel %vm1081_vm3, %v3897_v13, %v3868_v24  ;;  %v1736_v48 = vpop.permute.xlu1 %1735  ;;  %v1801_v53 = vmul.f32 %v1776_v19, %v3846_v29  ;;  %v2268_v52 = vld [vmem:[#allocation2 + $0x208] sm:$0xff] }
 0x53e   :  { %v1887_v40 = vrot.slane %v1886_v16, 1  ;;  %v1892_v3 = vrot.slane %v1891_v50, 2  ;;  %v2167_v5 = vsel %vm1083_vm4, %v3880_v27, %v2166_v7  ;;  %v1865_v32 = vadd.f32 %v1864_v49, %v1863_v21  ;;  %v1781_v30 = vpop.permute.xlu0 %1780 }
 0x53f   :  { %v2126_v47 = vsel %vm1079_vm2, %v1825_v63, %v2125_v2  ;;  %v1829_v39 = vrot.slane %v1828_v55, 2  ;;  %v2168_v44 = vsel %vm1085_vm5, %v3902_v4, %v2167_v5  ;;  %v1896_v13 = vsel %vm1804_vm9, %v1801_v53, 0.0 }
 0x540   :  { %v1888_v26 = vadd.f32 %v1887_v40, %v1886_v16  ;;  %v1893_v12 = vadd.f32 %v1892_v3, %v1891_v50  ;;  %v2169_v24 = vsel %vm1087_vm6, %v3912_v36, %v2168_v44  ;;  %v1866_v9 = vrot.slane %v1865_v32, 1  ;;  %v2271_v40 = vld [vmem:[#allocation2 + $0x220] sm:$0xff] }
 0x541   :  { %v1830_v34 = vadd.f32 %v1829_v39, %v1828_v55  ;;  %v2170_v27 = vsel %vm1089_vm7, %v2108_v41, %v2169_v24  ;;  %v1897_v29 = vrot.slane %v1896_v13, 4  ;;  %v1741_v23 = vpop.permute.xlu1 %1740  ;;  %v1792_v14 = vmul.f32 %v1731_v17, %v3788_v8 }
 0x542   :  { %v1894_v38 = vrot.slane %v1893_v12, 1  ;;  %2173 = vrot.lane.b32.xlu1 %v2170_v27, %s3096_s19  ;;  %v1802_v4 = vmul.f32 %v1781_v30, %v3865_v11  ;;  %v1793_v25 = vmul.f32 %v1736_v48, %v3812_v18  ;;  %v1867_v58 = vadd.f32 %v1866_v9, %v1865_v32  ;;  %v2270_v48 = vld [vmem:[#allocation2 + $0x218] sm:$0xff] }
 0x543   :  { %v1831_v61 = vrot.slane %v1830_v34, 1  ;;  %v1898_v36 = vadd.f32 %v1897_v29, %v1896_v13  ;;  %v1794_v57 = vmul.f32 %v1741_v23, %v3834_v60  ;;  %v1833_v1 = vsel %vm1804_vm9, %v1792_v14, 0.0 }
 0x544   :  { %v1895_v6 = vadd.f32 %v1894_v38, %v1893_v12  ;;  %v1903_v35 = vsel %vm1804_vm9, %v1802_v4, 0.0  ;;  %v1840_v59 = vsel %vm1804_vm9, %v1793_v25, 0.0  ;;  %v2132_v33 = vsel %vm1077_vm1, %v1874_v62, %v1867_v58  ;;  %v2273_v12 = vld [vmem:[#allocation2 + $0x230] sm:$0xff] }
 0x545   :  { %v1832_v15 = vadd.f32 %v1831_v61, %v1830_v34  ;;  %v1899_v8 = vrot.slane %v1898_v36, 2  ;;  %v1834_v22 = vrot.slane %v1833_v1, 4  ;;  %v1746_v11 = vpop.permute.xlu1 %1745  ;;  %v2133_v18 = vsel %vm1079_vm2, %v1881_v28, %v2132_v33  ;;  %v2269_v28 = vld [vmem:[#allocation2 + $0x210] sm:$0xff] }
 0x546   :  { %v1904_v37 = vrot.slane %v1903_v35, 4  ;;  %v1841_v56 = vrot.slane %v1840_v59, 4  ;;  %v1847_v31 = vsel %vm1804_vm9, %v1794_v57, 0.0  ;;  %v1795_v20 = vmul.f32 %v1746_v11, %v3822_v45  ;;  %v2274_v57 = vld [vmem:[#allocation2 + $0x238] sm:$0xff] }
 0x547   :  { %v2127_v60 = vsel %vm1081_vm3, %v1832_v15, %v2126_v47  ;;  %v1900_v46 = vadd.f32 %v1899_v8, %v1898_v36  ;;  %v1835_v10 = vadd.f32 %v1834_v22, %v1833_v1  ;;  %v1848_v17 = vrot.slane %v1847_v31, 4 }
 0x548   :  { %v1905_v54 = vadd.f32 %v1904_v37, %v1903_v35  ;;  %v1842_v42 = vadd.f32 %v1841_v56, %v1840_v59  ;;  %v2134_v62 = vsel %vm1081_vm3, %v1888_v26, %v2133_v18  ;;  %v1854_v41 = vsel %vm1804_vm9, %v1795_v20, 0.0  ;;  %v2272_v26 = vld [vmem:[#allocation2 + $0x228] sm:$0xff]  ;;  %v2277_v37 = vld [vmem:[#allocation2 + $0x250] sm:$0xff] }
 0x549   :  { %v1901_v43 = vrot.slane %v1900_v46, 1  ;;  %v1836_v19 = vrot.slane %v1835_v10, 2  ;;  %v1849_v2 = vadd.f32 %v1848_v17, %v1847_v31  ;;  %v1786_v51 = vpop.permute.xlu1 %1785  ;;  %v2135_v21 = vsel %vm1083_vm4, %v1895_v6, %v2134_v62  ;;  %v2275_v6 = vld [vmem:[#allocation2 + $0x240] sm:$0xff]  ;;  %v2276_v18 = vld [vmem:[#allocation2 + $0x248] sm:$0xff]  ;;  %v2281_v20 = vld [vmem:[#allocation2 + $0x270] sm:$0xff] }
 0x54a   :  { %v1906_v16 = vrot.slane %v1905_v54, 2  ;;  %v1843_v50 = vrot.slane %v1842_v42, 2  ;;  %v1803_v63 = vmul.f32 %v1786_v51, %v3857_v0  ;;  %v1855_v45 = vrot.slane %v1854_v41, 4  ;;  %v2279_v17 = vld [vmem:[#allocation2 + $0x260] sm:$0xff] }
 0x54b   :  { %v1902_v49 = vadd.f32 %v1901_v43, %v1900_v46  ;;  %v1837_v55 = vadd.f32 %v1836_v19, %v1835_v10  ;;  %v1850_v7 = vrot.slane %v1849_v2, 2  ;;  %v2897_v47 = vpack.c.bf16 %v2269_v28, %v2268_v52  ;;  %v2278_v10 = vld [vmem:[#allocation2 + $0x258] sm:$0xff]  ;;  %v2283_v52 = vld [vmem:[#allocation2 + $0x280] sm:$0xff] }
 0x54c   :  { %v1907_v3 = vadd.f32 %v1906_v16, %v1905_v54  ;;  %v1844_v5 = vadd.f32 %v1843_v50, %v1842_v42  ;;  %v1910_v53 = vsel %vm1804_vm9, %v1803_v63, 0.0  ;;  %v1856_v44 = vadd.f32 %v1855_v45, %v1854_v41  ;;  %v2280_v42 = vld [vmem:[#allocation2 + $0x268] sm:$0xff]  ;;  %v2387_v16 = vld [vmem:[%s3995_s3 + $0x3] ss:$0 sm:$0xff]  ;;  %v2390_v45 = vld [vmem:[%s3995_s3 + $0x4] ss:$0 sm:$0xff] }
 0x54d   :  { %v1838_v32 = vrot.slane %v1837_v55, 1  ;;  %v1851_v39 = vadd.f32 %v1850_v7, %v1849_v2  ;;  %v1911_v30 = vrot.slane %v1910_v53, 4  ;;  %v2136_v0 = vsel %vm1085_vm5, %v1902_v49, %v2135_v21  ;;  %2898 = vmatprep.subr.bf16.mxu0 %v2897_v47  ;;  %v2282_v21 = vld [vmem:[#allocation2 + $0x278] sm:$0xff] }
 0x54e   :  { %v1908_v24 = vrot.slane %v1907_v3, 1  ;;  %v1845_v13 = vrot.slane %v1844_v5, 1  ;;  %v2901_v9 = vpack.c.bf16 %v2271_v40, %v2270_v48  ;;  %v1857_v29 = vrot.slane %v1856_v44, 2  ;;  %2900 = vmatpush3.bf16.msra.mxu0 %v2897_v47 }
 0x54f   :  { %v1839_v34 = vadd.f32 %v1838_v32, %v1837_v55  ;;  %v1852_v27 = vrot.slane %v1851_v39, 1  ;;  %v1912_v23 = vadd.f32 %v1911_v30, %v1910_v53  ;;  %v2905_v4 = vpack.c.bf16 %v2273_v12, %v2272_v26 }
 0x550   :  { %v1909_v38 = vadd.f32 %v1908_v24, %v1907_v3  ;;  %v1846_v14 = vadd.f32 %v1845_v13, %v1844_v5  ;;  %2902 = vmatprep.subr.bf16.mxu0 %v2901_v9  ;;  %v1858_v58 = vadd.f32 %v1857_v29, %v1856_v44  ;;  %v2909_v8 = vpack.c.bf16 %v2275_v6, %v2274_v57 }
 0x551   :  { %v1853_v25 = vadd.f32 %v1852_v27, %v1851_v39  ;;  %v1913_v61 = vrot.slane %v1912_v23, 2  ;;  %v2128_v36 = vsel %vm1083_vm4, %v1839_v34, %v2127_v60  ;;  %v2913_v60 = vpack.c.bf16 %v2277_v37, %v2276_v18 }
 0x552   :  { %v2129_v1 = vsel %vm1085_vm5, %v1846_v14, %v2128_v36  ;;  %v2137_v35 = vsel %vm1087_vm6, %v1909_v38, %v2136_v0  ;;  %v1859_v59 = vrot.slane %v1858_v58, 1  ;;  %2904 = vmatpush3.bf16.msra.mxu0 %v2901_v9  ;;  %v2917_v54 = vpack.c.bf16 %v2279_v17, %v2278_v10 }
 0x553   :  { %v1914_v33 = vadd.f32 %v1913_v61, %v1912_v23  ;;  %v2130_v15 = vsel %vm1087_vm6, %v1853_v25, %v2129_v1  ;;  %2906 = vmatprep.subr.bf16.mxu0 %v2905_v4  ;;  %v2921_v62 = vpack.c.bf16 %v2281_v20, %v2280_v42  ;;  %v2925_v28 = vpack.c.bf16 %v2283_v52, %v2282_v21 }
 0x554   :  { %v1860_v22 = vadd.f32 %v1859_v59, %v1858_v58 }
 0x555   :  { %v1915_v11 = vrot.slane %v1914_v33, 1 }
 0x556   :  { %v2131_v31 = vsel %vm1089_vm7, %v1860_v22, %v2130_v15  ;;  %2908 = vmatpush3.bf16.msra.mxu0 %v2905_v4 }
 0x557   :  { %v1916_v56 = vadd.f32 %v1915_v11, %v1914_v33  ;;  %2910 = vmatprep.subr.bf16.mxu0 %v2909_v8 }
 0x559   :  { %v2138_v46 = vsel %vm1089_vm7, %v1916_v56, %v2137_v35 }
 0x55a   :  { %2912 = vmatpush3.bf16.msra.mxu0 %v2909_v8 }
 0x55b   :  { %2914 = vmatprep.subr.bf16.mxu0 %v2913_v60 }
 0x55e   :  { %2916 = vmatpush3.bf16.msra.mxu0 %v2913_v60 }
 0x55f   :  { %2918 = vmatprep.subr.bf16.mxu0 %v2917_v54 }
 0x562   :  { %2920 = vmatpush3.bf16.msra.mxu0 %v2917_v54 }
 0x563   :  { %2922 = vmatprep.subr.bf16.mxu0 %v2921_v62 }
 0x566   :  { %2924 = vmatpush3.bf16.msra.mxu0 %v2921_v62 }
 0x567   :  { %2926 = vmatprep.subr.bf16.mxu0 %v2925_v28 }
 0x56a   :  { %2928 = vmatpush3.bf16.msra.mxu0 %v2925_v28 }
 0x5a7   :  { %v2172_v43 = vpop.permute.xlu0 %2171 }
 0x5a8   :  { %v2177_v19 = vsel %vm1804_vm9, %v2131_v31, %v2172_v43 }
 0x5a9   :  { %2731 = vmatprep.mubr.msk.f32.mxu1 %vm2184_vm10, %v2177_v19 }
 0x5b4   :  { %v2174_v2 = vpop.permute.xlu1 %2173 }
 0x5b5   :  { %v2178_v51 = vsel %vm1804_vm9, %v2138_v46, %v2174_v2 }
 0x5b6   :  { %2732 = vmatmul.mubr.msk.f32.vlgmr.msra.gmra.mrb[18].mxu1 %vm2184_vm10, %v2178_v51 }
 0x689   :  { %v2733_v50 = vpop.f32.mrb[18].mxu1 }
 0x68a   :  { %v2263_v41 = vadd.f32 %v2733_v50, %v2387_v16  ;;  %v2257_v63 = vpop.f32.mrb[19].mxu1 }
 0x68b   :  { %v2258_v49 = vadd.f32 %v2387_v16, %v2257_v63 }
 0x68c   :  { %v2267_v7 = vmax.f32 %v2263_v41, 0.0 }
 0x68d   :  { %v2266_v55 = vmax.f32 %v2258_v49, 0.0 }
 0x68f   :  { %2766 = vmatprep.mubr.f32.mxu0 %v2266_v55 }
 0x690   :  { %2767 = vmatmul.mubr.f32.vlgmr.msra.gmra.mrb[32].mxu0 %v2267_v7 }
 0x763   :  { %v2768_v48 = vpop.f32.mrb[32].mxu0 }
 0x764   :  { %v2360_v40 = vadd.f32 %v2768_v48, %v2390_v45  ;;  %v2354_v3 = vpop.f32.mrb[33].mxu0 }
 0x765   :  { %v2355_v5 = vadd.f32 %v2390_v45, %v2354_v3 }
 0x766   :  { %v2364_v53 = vmax.f32 %v2360_v40, 0.0 }
 0x767   :  { %v2363_v47 = vmax.f32 %v2355_v5, 0.0 }
 0x768   :  { %2366 = vst [vmem:[#allocation5 + $0x8] sm:$0xff] %v2364_v53 }
 0x769   :  { %2365 = vst [vmem:[#allocation5] sm:$0xff] %v2363_v47 }
 0x76a   :  { %3074 = shalt.err (!%p3071_p12)
}
 0x76b   :  { %s3075_s30 = scalar_lea.hbm %s3996_s4, 256 }
 0x76c   :  { %p3076_p13 = scmp.ne.s32.totalorder %s3996_s4, %s3075_s30  ;;  %p3079_p0 = scmp.lt.u32.totalorder %s3075_s30, %s3996_s4 }
 0x76e   :  { %p3081_p1 = pnand %p3079_p0, %p3076_p13 }
 0x770   :  { %3084 = shalt.err (!%p3081_p1)
}
 0x771   :  { %2378 = dma.vmem_to_hbm [thread:$0]  %s2373_s27, 256, %s3996_s4, [#allocation4], %s3090_s25, %s3090_s25, %s3091_s26  }
 0x772   :  { %3087 = dma.done.wait [#allocation4], 256  }
 0x773   :  { %3088 = vsyncadd [#allocation4], 4294967040 }
 0x774   :  { %2382 = vsyncpa [#allocation3], 1 }
 0x775   :  { %2383 = vsyncpa [#allocation4], 1 }

</bundles_post_ra>
